<compile_context>
chip_gen: v5e
topology: v5e:2x2
jax: 0.10.0
libtpu: 0.0.40
codegen_flags: <defaults>
</compile_context>

<pallas_src>
import functools

import jax
import jax.numpy as jnp
from jax import lax
from jax.experimental import pallas as pl
from jax.experimental.pallas import tpu as pltpu


def _sigmoid(x):
    # exact identity sigma(x) = 0.5 * (tanh(x/2) + 1); used by the JAX reference.
    return 0.5 * (jnp.tanh(0.5 * x) + 1.0)


def tpalstm_kernel(x_ref, wq_ref, wk_ref, wv_ref, wo_ref, bo_ref,
                   whid_ref, bhid_ref, wih_ref, whh_ref, blstm_ref, gs_ref,
                   wlin_ref, blin_ref, o_ref, hrows_ref, *,
                   heads, head_dim, hidden, n_layers):
    f32 = jnp.float32
    NB, L, F = x_ref.shape            # batch block, obs_len, feature_size
    G = 4 * hidden
    P = o_ref.shape[-1]

    x2 = x_ref[...].reshape(NB * L, F)                         # (NB*L, F)

    # ---- SelfAttention(x, x, x, mask=None) -----------------------------------
    # Per-head Linear folded into block-diagonal (F, F) weights (one MXU pass
    # over all batch*seq rows); the 1/sqrt(F) softmax scale is folded into wq.
    qp = jnp.dot(x2, wq_ref[...], preferred_element_type=f32)  # (NB*L, F)
    kp = jnp.dot(x2, wk_ref[...], preferred_element_type=f32)
    vp = jnp.dot(x2, wv_ref[...], preferred_element_type=f32)
    wo = wo_ref[...]                                           # (F, F) pre-transposed

    attn_parts = []
    for n in range(NB):
        r = slice(n * L, (n + 1) * L)
        acc = jnp.zeros((L, F), f32)
        for h in range(heads):
            c = slice(h * head_dim, (h + 1) * head_dim)
            qh, kh, vh = qp[r, c], kp[r, c], vp[r, c]          # (L, D)
            # energy = einsum('qd,kd->qk'): contract last dims of both operands.
            e = lax.dot_general(qh, kh, (((1,), (1,)), ((), ())),
                                preferred_element_type=f32)    # (L, L)
            e = e - jnp.max(e, axis=-1, keepdims=True)
            p = jnp.exp(e)
            attn = p / jnp.sum(p, axis=-1, keepdims=True)      # exact softmax
            head_out = jnp.dot(attn, vh, preferred_element_type=f32)   # (L, D)
            # fc_out contribution of this head (no lane-axis concatenate).
            acc = acc + jnp.dot(head_out, wo[c, :], preferred_element_type=f32)
        attn_parts.append(acc)
    attn_all = jnp.concatenate(attn_parts, axis=0) if NB > 1 else attn_parts[0]
    attn_all = attn_all + bo_ref[...]                          # (NB*L, F)

    # ---- hidden Linear + hoisted layer-0 gate-input matmul --------------------
    xc = (jnp.dot(attn_all, whid_ref[...], preferred_element_type=f32)
          + bhid_ref[...])                                     # (NB*L, hidden)
    xg0 = (jnp.dot(xc, wih_ref[0], preferred_element_type=f32)
           + blstm_ref[0])                                     # (NB*L, 4*hidden)
    xg0 = xg0.reshape(NB, L, G)

    # ---- stacked LSTM, unrolled over time (state stays in vregs) --------------
    gs = gs_ref[...]                                           # (1, 4*hidden) lane scales
    gb = 1.0 - gs                                              # hoisted affine offset
    whh0 = whh_ref[0]                                          # (hidden, 4*hidden)

    def cell(gates, c_prev):
        # One full-width tanh: sigma on i/f/o lanes (s=0.5), tanh on g lanes (s=1).
        z = gs * jnp.tanh(gs * gates) + gb
        i_g = z[:, 0 * hidden:1 * hidden]
        f_g = z[:, 1 * hidden:2 * hidden]
        g_g = z[:, 2 * hidden:3 * hidden]
        o_g = z[:, 3 * hidden:4 * hidden]
        c_new = f_g * c_prev + i_g * g_g
        return o_g * jnp.tanh(c_new), c_new

    h_st = [jnp.zeros((NB, hidden), f32) for _ in range(n_layers)]
    c_st = [jnp.zeros((NB, hidden), f32) for _ in range(n_layers)]
    # torch only stores H[:, t, :] for t != L-1; the last step's state is never
    # read, so it is skipped (outputs are identical).
    # TODO(synk): switch to lax.fori_loop + this VMEM scratch if L/hidden grow
    # (bounds vreg live ranges; matters on v7x's 64 MiB/TC VMEM).
    for t in range(L - 1):
        gates = xg0[:, t, :] + jnp.dot(h_st[0], whh0, preferred_element_type=f32)
        h_st[0], c_st[0] = cell(gates, c_st[0])
        inp = h_st[0]
        for l in range(1, n_layers):
            gates = (jnp.dot(inp, wih_ref[l], preferred_element_type=f32)
                     + jnp.dot(h_st[l], whh_ref[l], preferred_element_type=f32)
                     + blstm_ref[l])
            h_st[l], c_st[l] = cell(gates, c_st[l])
            inp = h_st[l]
        hrows_ref[:, t, :] = inp                               # (NB, hidden)

    # ---- ReLU + output Linear: one matmul, one store --------------------------
    hm = jnp.maximum(hrows_ref[...].reshape(NB * (L - 1), hidden), 0.0)
    y = jnp.dot(hm, wlin_ref[...], preferred_element_type=f32) + blin_ref[...]
    o_ref[...] = y.reshape(NB, L - 1, P)


def tpalstm_forward(x, params, *, heads, hidden, n_layers, output_horizon,
                    batch_blocks=1):
    """x: (N, L, F) f32. Returns (N, L-1, output_horizon) like TPALSTM.forward.

    batch_blocks=1 puts the whole batch in one grid step (best on v5e/v6e);
    pass batch_blocks=2 on v7x to keep both TensorCores busy.
    """
    (wq, wk, wv, wo, bo, whid, bhid, wih, whh, bih, bhh, wlin, blin) = params
    N, L, F = x.shape
    D = F // heads
    assert D * heads == F
    assert N % batch_blocks == 0
    NB = N // batch_blocks
    P = output_horizon
    G = 4 * hidden

    # Pre-transpose / fold everything once in XLA (never per grid step in-kernel).
    scale = 1.0 / (float(F) ** 0.5)
    eye_h = jnp.eye(heads, dtype=jnp.float32)
    wq_bd = jnp.kron(eye_h, wq.T) * scale      # per-head projection + softmax scale
    wk_bd = jnp.kron(eye_h, wk.T)
    wv_bd = jnp.kron(eye_h, wv.T)

    # Per-lane scale for the fused gate nonlinearity (torch gate order i,f,g,o).
    gate_scale = jnp.concatenate(
        [jnp.full((1, hidden), 0.5, jnp.float32),   # i  (sigmoid)
         jnp.full((1, hidden), 0.5, jnp.float32),   # f  (sigmoid)
         jnp.full((1, hidden), 1.0, jnp.float32),   # g  (tanh)
         jnp.full((1, hidden), 0.5, jnp.float32)],  # o  (sigmoid)
        axis=1)

    kernel = functools.partial(tpalstm_kernel, heads=heads, head_dim=D,
                               hidden=hidden, n_layers=n_layers)

    def const_spec(shape):
        nd = len(shape)
        return pl.BlockSpec(shape, lambda i: (0,) * nd)

    out = pl.pallas_call(
        kernel,
        out_shape=jax.ShapeDtypeStruct((N, L - 1, P), jnp.float32),
        grid_spec=pltpu.PrefetchScalarGridSpec(
            num_scalar_prefetch=0,
            grid=(batch_blocks,),
            in_specs=[
                pl.BlockSpec((NB, L, F), lambda i: (i, 0, 0)),   # x batch block
                const_spec((F, F)),                 # wq block-diag (scale folded)
                const_spec((F, F)),                 # wk block-diag
                const_spec((F, F)),                 # wv block-diag
                const_spec((F, F)),                 # fc_out weight, pre-transposed
                const_spec((1, F)),                 # fc_out bias
                const_spec((F, hidden)),            # hidden Linear weight, pre-transposed
                const_spec((1, hidden)),            # hidden Linear bias
                const_spec((n_layers, hidden, G)),  # LSTM W_ih^T (stacked)
                const_spec((n_layers, hidden, G)),  # LSTM W_hh^T (stacked)
                const_spec((n_layers, 1, G)),       # LSTM b_ih + b_hh
                const_spec((1, G)),                 # fused-gate lane scales
                const_spec((hidden, P)),            # output Linear weight, pre-transposed
                const_spec((1, P)),                 # output Linear bias
            ],
            out_specs=pl.BlockSpec((NB, L - 1, P), lambda i: (i, 0, 0)),
            scratch_shapes=[pltpu.VMEM((NB, L - 1, hidden), jnp.float32)],
        ),
        compiler_params=pltpu.CompilerParams(
            dimension_semantics=("parallel",)),
    )(x, wq_bd, wk_bd, wv_bd, wo.T, bo.reshape(1, F),
      whid.T, bhid.reshape(1, hidden),
      wih.transpose(0, 2, 1), whh.transpose(0, 2, 1),
      (bih + bhh).reshape(n_layers, 1, G),
      gate_scale,
      wlin.T, blin.reshape(1, P))
    return out


def ref_tpalstm(x, params, *, heads, hidden, n_layers, output_horizon):
    """Pure-JAX reference mirroring the PyTorch TPALSTM.forward exactly."""
    (wq, wk, wv, wo, bo, whid, bhid, wih, whh, bih, bhh, wlin, blin) = params
    N, L, F = x.shape
    D = F // heads

    # SelfAttention with mask=None
    xs = x.reshape(N, L, heads, D)
    v = xs @ wv.T
    k = xs @ wk.T
    q = xs @ wq.T
    energy = jnp.einsum('nqhd,nkhd->nhqk', q, k)
    attn = jax.nn.softmax(energy / (F ** 0.5), axis=3)
    out = jnp.einsum('nhql,nlhd->nqhd', attn, v).reshape(N, L, F)
    out = out @ wo.T + bo

    xc = out @ whid.T + bhid                     # (N, L, hidden)
    h = jnp.zeros((n_layers, N, hidden), jnp.float32)
    c = jnp.zeros((n_layers, N, hidden), jnp.float32)
    hs = []
    for t in range(L):
        inp = xc[:, t, :]
        new_h, new_c = [], []
        for l in range(n_layers):
            gates = inp @ wih[l].T + bih[l] + h[l] @ whh[l].T + bhh[l]
            i_g = _sigmoid(gates[:, 0 * hidden:1 * hidden])
            f_g = _sigmoid(gates[:, 1 * hidden:2 * hidden])
            g_g = jnp.tanh(gates[:, 2 * hidden:3 * hidden])
            o_g = _sigmoid(gates[:, 3 * hidden:4 * hidden])
            cc = f_g * c[l] + i_g * g_g
            hh = o_g * jnp.tanh(cc)
            new_h.append(hh)
            new_c.append(cc)
            inp = hh
        h = jnp.stack(new_h, axis=0)
        c = jnp.stack(new_c, axis=0)
        if t != L - 1:
            hs.append(h[-1])
    Hm = jnp.maximum(jnp.stack(hs, axis=1), 0.0)   # (N, L-1, hidden)
    y = Hm @ wlin.T + blin
    return y[:, -L:, :]                            # no-op slice, as in the module


if __name__ == "__main__":
    N, L = 2, 8                 # batch, obs_len
    input_size = 32             # feature_size of the attention
    output_horizon = 4          # == heads of the attention, and output width
    hidden = 32                 # hidden_size
    n_layers = 1
    heads = output_horizon
    D = input_size // heads
    G = 4 * hidden

    key = jax.random.PRNGKey(0)
    ks = jax.random.split(key, 16)
    x = jax.random.normal(ks[0], (N, L, input_size), jnp.float32)

    wq = 0.1 * jax.random.normal(ks[1], (D, D), jnp.float32)
    wk = 0.1 * jax.random.normal(ks[2], (D, D), jnp.float32)
    wv = 0.1 * jax.random.normal(ks[3], (D, D), jnp.float32)
    wo = 0.1 * jax.random.normal(ks[4], (input_size, input_size), jnp.float32)
    bo = 0.1 * jax.random.normal(ks[5], (input_size,), jnp.float32)
    whid = 0.1 * jax.random.normal(ks[6], (hidden, input_size), jnp.float32)
    bhid = 0.1 * jax.random.normal(ks[7], (hidden,), jnp.float32)
    wih = 0.1 * jax.random.normal(ks[8], (n_layers, G, hidden), jnp.float32)
    whh = 0.1 * jax.random.normal(ks[9], (n_layers, G, hidden), jnp.float32)
    bih = 0.1 * jax.random.normal(ks[10], (n_layers, G), jnp.float32)
    bhh = 0.1 * jax.random.normal(ks[11], (n_layers, G), jnp.float32)
    wlin = 0.1 * jax.random.normal(ks[12], (output_horizon, hidden), jnp.float32)
    blin = 0.1 * jax.random.normal(ks[13], (output_horizon,), jnp.float32)

    params = (wq, wk, wv, wo, bo, whid, bhid, wih, whh, bih, bhh, wlin, blin)

    out = tpalstm_forward(x, params, heads=heads, hidden=hidden,
                          n_layers=n_layers, output_horizon=output_horizon)
    out = jax.block_until_ready(out)

    ref = ref_tpalstm(x, params, heads=heads, hidden=hidden,
                      n_layers=n_layers, output_horizon=output_horizon)
    assert out.shape == (N, L - 1, output_horizon)
    assert jnp.allclose(out, ref, atol=2e-3, rtol=2e-3), (
        f"mismatch vs reference, max abs err {jnp.max(jnp.abs(out - ref))}")

    print("KERNEL_OK")
</pallas_src>

<mosaic_0001>
module attributes {stable_mosaic.version = 11 : i64} {
  func.func @tpalstm_kernel(%arg0: i32, %arg1: memref<2x8x32xf32, #tpu.memory_space<vmem>>, %arg2: memref<32x32xf32, #tpu.memory_space<vmem>>, %arg3: memref<32x32xf32, #tpu.memory_space<vmem>>, %arg4: memref<32x32xf32, #tpu.memory_space<vmem>>, %arg5: memref<32x32xf32, #tpu.memory_space<vmem>>, %arg6: memref<1x32xf32, #tpu.memory_space<vmem>>, %arg7: memref<32x32xf32, #tpu.memory_space<vmem>>, %arg8: memref<1x32xf32, #tpu.memory_space<vmem>>, %arg9: memref<1x32x128xf32, #tpu.memory_space<vmem>>, %arg10: memref<1x32x128xf32, #tpu.memory_space<vmem>>, %arg11: memref<1x1x128xf32, #tpu.memory_space<vmem>>, %arg12: memref<1x128xf32, #tpu.memory_space<vmem>>, %arg13: memref<32x4xf32, #tpu.memory_space<vmem>>, %arg14: memref<1x4xf32, #tpu.memory_space<vmem>>, %arg15: memref<2x7x4xf32, #tpu.memory_space<vmem>>, %arg16: memref<2x7x32xf32, #tpu.memory_space<vmem>>) attributes {dimension_semantics = [#tpu.dimension_semantics<parallel>], iteration_bounds = array<i64: 1>, scalar_prefetch = 0 : i64, scratch_operands = 1 : i64, tpu.core_type = #tpu.core_type<tc>, window_params = [{transform_indices = @transform_0, window_bounds = array<i64: 2, 8, 32>}, {pipeline_mode = #tpu.pipeline_mode<synchronous>, transform_indices = @transform_1, window_bounds = array<i64: 32, 32>}, {pipeline_mode = #tpu.pipeline_mode<synchronous>, transform_indices = @transform_2, window_bounds = array<i64: 32, 32>}, {pipeline_mode = #tpu.pipeline_mode<synchronous>, transform_indices = @transform_3, window_bounds = array<i64: 32, 32>}, {pipeline_mode = #tpu.pipeline_mode<synchronous>, transform_indices = @transform_4, window_bounds = array<i64: 32, 32>}, {pipeline_mode = #tpu.pipeline_mode<synchronous>, transform_indices = @transform_5, window_bounds = array<i64: 1, 32>}, {pipeline_mode = #tpu.pipeline_mode<synchronous>, transform_indices = @transform_6, window_bounds = array<i64: 32, 32>}, {pipeline_mode = #tpu.pipeline_mode<synchronous>, transform_indices = @transform_7, window_bounds = array<i64: 1, 32>}, {pipeline_mode = #tpu.pipeline_mode<synchronous>, transform_indices = @transform_8, window_bounds = array<i64: 1, 32, 128>}, {pipeline_mode = #tpu.pipeline_mode<synchronous>, transform_indices = @transform_9, window_bounds = array<i64: 1, 32, 128>}, {pipeline_mode = #tpu.pipeline_mode<synchronous>, transform_indices = @transform_10, window_bounds = array<i64: 1, 1, 128>}, {pipeline_mode = #tpu.pipeline_mode<synchronous>, transform_indices = @transform_11, window_bounds = array<i64: 1, 128>}, {pipeline_mode = #tpu.pipeline_mode<synchronous>, transform_indices = @transform_12, window_bounds = array<i64: 32, 4>}, {pipeline_mode = #tpu.pipeline_mode<synchronous>, transform_indices = @transform_13, window_bounds = array<i64: 1, 4>}, {transform_indices = @transform_14, window_bounds = array<i64: 2, 7, 4>}]} {
    %c0 = arith.constant 0 : index
    %c0_0 = arith.constant 0 : index
    %c0_1 = arith.constant 0 : index
    %0 = vector.load %arg1[%c0, %c0_0, %c0_1] : memref<2x8x32xf32, #tpu.memory_space<vmem>>, vector<2x8x32xf32>
    %1 = vector.shape_cast %0 : vector<2x8x32xf32> to vector<16x32xf32>
    %c0_2 = arith.constant 0 : index
    %c0_3 = arith.constant 0 : index
    %2 = vector.load %arg2[%c0_2, %c0_3] : memref<32x32xf32, #tpu.memory_space<vmem>>, vector<32x32xf32>
    %cst = arith.constant dense<0.000000e+00> : vector<16x32xf32>
    %3 = tpu.matmul %1, %2, %cst {dimension_numbers = #tpu.dot_dimension_numbers<[1], [0], [0], [1], [0, 0, 1, 1], [], []>} : vector<16x32xf32>, vector<32x32xf32>, vector<16x32xf32> -> vector<16x32xf32>
    %c0_4 = arith.constant 0 : index
    %c0_5 = arith.constant 0 : index
    %4 = vector.load %arg3[%c0_4, %c0_5] : memref<32x32xf32, #tpu.memory_space<vmem>>, vector<32x32xf32>
    %cst_6 = arith.constant dense<0.000000e+00> : vector<16x32xf32>
    %5 = tpu.matmul %1, %4, %cst_6 {dimension_numbers = #tpu.dot_dimension_numbers<[1], [0], [0], [1], [0, 0, 1, 1], [], []>} : vector<16x32xf32>, vector<32x32xf32>, vector<16x32xf32> -> vector<16x32xf32>
    %c0_7 = arith.constant 0 : index
    %c0_8 = arith.constant 0 : index
    %6 = vector.load %arg4[%c0_7, %c0_8] : memref<32x32xf32, #tpu.memory_space<vmem>>, vector<32x32xf32>
    %cst_9 = arith.constant dense<0.000000e+00> : vector<16x32xf32>
    %7 = tpu.matmul %1, %6, %cst_9 {dimension_numbers = #tpu.dot_dimension_numbers<[1], [0], [0], [1], [0, 0, 1, 1], [], []>} : vector<16x32xf32>, vector<32x32xf32>, vector<16x32xf32> -> vector<16x32xf32>
    %c0_10 = arith.constant 0 : index
    %c0_11 = arith.constant 0 : index
    %8 = vector.load %arg5[%c0_10, %c0_11] : memref<32x32xf32, #tpu.memory_space<vmem>>, vector<32x32xf32>
    %cst_12 = arith.constant 0.000000e+00 : f32
    %9 = vector.broadcast %cst_12 : f32 to vector<8x32xf32>
    %10 = vector.extract_strided_slice %3 {offsets = [0, 0], sizes = [8, 8], strides = [1, 1]} : vector<16x32xf32> to vector<8x8xf32>
    %11 = vector.extract_strided_slice %5 {offsets = [0, 0], sizes = [8, 8], strides = [1, 1]} : vector<16x32xf32> to vector<8x8xf32>
    %12 = vector.extract_strided_slice %7 {offsets = [0, 0], sizes = [8, 8], strides = [1, 1]} : vector<16x32xf32> to vector<8x8xf32>
    %cst_13 = arith.constant dense<0.000000e+00> : vector<8x8xf32>
    %13 = tpu.matmul %10, %11, %cst_13 {dimension_numbers = #tpu.dot_dimension_numbers<[1], [1], [0], [0], [0, 0, 1, 0], [], []>} : vector<8x8xf32>, vector<8x8xf32>, vector<8x8xf32> -> vector<8x8xf32>
    %cst_14 = arith.constant dense<0xFF800000> : vector<8xf32>
    %14 = vector.multi_reduction <maximumf>, %13, %cst_14 [1] : vector<8x8xf32> to vector<8xf32>
    %15 = vector.shape_cast %14 : vector<8xf32> to vector<8x1xf32>
    %16 = vector.broadcast %15 : vector<8x1xf32> to vector<8x8xf32>
    %17 = arith.subf %13, %16 : vector<8x8xf32>
    %18 = math.exp %17 : vector<8x8xf32>
    %cst_15 = arith.constant dense<0.000000e+00> : vector<8xf32>
    %19 = vector.multi_reduction <add>, %18, %cst_15 [1] : vector<8x8xf32> to vector<8xf32>
    %20 = vector.shape_cast %19 : vector<8xf32> to vector<8x1xf32>
    %21 = vector.broadcast %20 : vector<8x1xf32> to vector<8x8xf32>
    %22 = arith.divf %18, %21 : vector<8x8xf32>
    %cst_16 = arith.constant dense<0.000000e+00> : vector<8x8xf32>
    %23 = tpu.matmul %22, %12, %cst_16 {dimension_numbers = #tpu.dot_dimension_numbers<[1], [0], [0], [1], [0, 0, 1, 1], [], []>} : vector<8x8xf32>, vector<8x8xf32>, vector<8x8xf32> -> vector<8x8xf32>
    %24 = vector.extract_strided_slice %8 {offsets = [0, 0], sizes = [8, 32], strides = [1, 1]} : vector<32x32xf32> to vector<8x32xf32>
    %cst_17 = arith.constant dense<0.000000e+00> : vector<8x32xf32>
    %25 = tpu.matmul %23, %24, %cst_17 {dimension_numbers = #tpu.dot_dimension_numbers<[1], [0], [0], [1], [0, 0, 1, 1], [], []>} : vector<8x8xf32>, vector<8x32xf32>, vector<8x32xf32> -> vector<8x32xf32>
    %26 = arith.addf %9, %25 : vector<8x32xf32>
    %27 = vector.extract_strided_slice %3 {offsets = [0, 8], sizes = [8, 8], strides = [1, 1]} : vector<16x32xf32> to vector<8x8xf32>
    %28 = vector.extract_strided_slice %5 {offsets = [0, 8], sizes = [8, 8], strides = [1, 1]} : vector<16x32xf32> to vector<8x8xf32>
    %29 = vector.extract_strided_slice %7 {offsets = [0, 8], sizes = [8, 8], strides = [1, 1]} : vector<16x32xf32> to vector<8x8xf32>
    %cst_18 = arith.constant dense<0.000000e+00> : vector<8x8xf32>
    %30 = tpu.matmul %27, %28, %cst_18 {dimension_numbers = #tpu.dot_dimension_numbers<[1], [1], [0], [0], [0, 0, 1, 0], [], []>} : vector<8x8xf32>, vector<8x8xf32>, vector<8x8xf32> -> vector<8x8xf32>
    %cst_19 = arith.constant dense<0xFF800000> : vector<8xf32>
    %31 = vector.multi_reduction <maximumf>, %30, %cst_19 [1] : vector<8x8xf32> to vector<8xf32>
    %32 = vector.shape_cast %31 : vector<8xf32> to vector<8x1xf32>
    %33 = vector.broadcast %32 : vector<8x1xf32> to vector<8x8xf32>
    %34 = arith.subf %30, %33 : vector<8x8xf32>
    %35 = math.exp %34 : vector<8x8xf32>
    %cst_20 = arith.constant dense<0.000000e+00> : vector<8xf32>
    %36 = vector.multi_reduction <add>, %35, %cst_20 [1] : vector<8x8xf32> to vector<8xf32>
    %37 = vector.shape_cast %36 : vector<8xf32> to vector<8x1xf32>
    %38 = vector.broadcast %37 : vector<8x1xf32> to vector<8x8xf32>
    %39 = arith.divf %35, %38 : vector<8x8xf32>
    %cst_21 = arith.constant dense<0.000000e+00> : vector<8x8xf32>
    %40 = tpu.matmul %39, %29, %cst_21 {dimension_numbers = #tpu.dot_dimension_numbers<[1], [0], [0], [1], [0, 0, 1, 1], [], []>} : vector<8x8xf32>, vector<8x8xf32>, vector<8x8xf32> -> vector<8x8xf32>
    %41 = vector.extract_strided_slice %8 {offsets = [8, 0], sizes = [8, 32], strides = [1, 1]} : vector<32x32xf32> to vector<8x32xf32>
    %cst_22 = arith.constant dense<0.000000e+00> : vector<8x32xf32>
    %42 = tpu.matmul %40, %41, %cst_22 {dimension_numbers = #tpu.dot_dimension_numbers<[1], [0], [0], [1], [0, 0, 1, 1], [], []>} : vector<8x8xf32>, vector<8x32xf32>, vector<8x32xf32> -> vector<8x32xf32>
    %43 = arith.addf %26, %42 : vector<8x32xf32>
    %44 = vector.extract_strided_slice %3 {offsets = [0, 16], sizes = [8, 8], strides = [1, 1]} : vector<16x32xf32> to vector<8x8xf32>
    %45 = vector.extract_strided_slice %5 {offsets = [0, 16], sizes = [8, 8], strides = [1, 1]} : vector<16x32xf32> to vector<8x8xf32>
    %46 = vector.extract_strided_slice %7 {offsets = [0, 16], sizes = [8, 8], strides = [1, 1]} : vector<16x32xf32> to vector<8x8xf32>
    %cst_23 = arith.constant dense<0.000000e+00> : vector<8x8xf32>
    %47 = tpu.matmul %44, %45, %cst_23 {dimension_numbers = #tpu.dot_dimension_numbers<[1], [1], [0], [0], [0, 0, 1, 0], [], []>} : vector<8x8xf32>, vector<8x8xf32>, vector<8x8xf32> -> vector<8x8xf32>
    %cst_24 = arith.constant dense<0xFF800000> : vector<8xf32>
    %48 = vector.multi_reduction <maximumf>, %47, %cst_24 [1] : vector<8x8xf32> to vector<8xf32>
    %49 = vector.shape_cast %48 : vector<8xf32> to vector<8x1xf32>
    %50 = vector.broadcast %49 : vector<8x1xf32> to vector<8x8xf32>
    %51 = arith.subf %47, %50 : vector<8x8xf32>
    %52 = math.exp %51 : vector<8x8xf32>
    %cst_25 = arith.constant dense<0.000000e+00> : vector<8xf32>
    %53 = vector.multi_reduction <add>, %52, %cst_25 [1] : vector<8x8xf32> to vector<8xf32>
    %54 = vector.shape_cast %53 : vector<8xf32> to vector<8x1xf32>
    %55 = vector.broadcast %54 : vector<8x1xf32> to vector<8x8xf32>
    %56 = arith.divf %52, %55 : vector<8x8xf32>
    %cst_26 = arith.constant dense<0.000000e+00> : vector<8x8xf32>
    %57 = tpu.matmul %56, %46, %cst_26 {dimension_numbers = #tpu.dot_dimension_numbers<[1], [0], [0], [1], [0, 0, 1, 1], [], []>} : vector<8x8xf32>, vector<8x8xf32>, vector<8x8xf32> -> vector<8x8xf32>
    %58 = vector.extract_strided_slice %8 {offsets = [16, 0], sizes = [8, 32], strides = [1, 1]} : vector<32x32xf32> to vector<8x32xf32>
    %cst_27 = arith.constant dense<0.000000e+00> : vector<8x32xf32>
    %59 = tpu.matmul %57, %58, %cst_27 {dimension_numbers = #tpu.dot_dimension_numbers<[1], [0], [0], [1], [0, 0, 1, 1], [], []>} : vector<8x8xf32>, vector<8x32xf32>, vector<8x32xf32> -> vector<8x32xf32>
    %60 = arith.addf %43, %59 : vector<8x32xf32>
    %61 = vector.extract_strided_slice %3 {offsets = [0, 24], sizes = [8, 8], strides = [1, 1]} : vector<16x32xf32> to vector<8x8xf32>
    %62 = vector.extract_strided_slice %5 {offsets = [0, 24], sizes = [8, 8], strides = [1, 1]} : vector<16x32xf32> to vector<8x8xf32>
    %63 = vector.extract_strided_slice %7 {offsets = [0, 24], sizes = [8, 8], strides = [1, 1]} : vector<16x32xf32> to vector<8x8xf32>
    %cst_28 = arith.constant dense<0.000000e+00> : vector<8x8xf32>
    %64 = tpu.matmul %61, %62, %cst_28 {dimension_numbers = #tpu.dot_dimension_numbers<[1], [1], [0], [0], [0, 0, 1, 0], [], []>} : vector<8x8xf32>, vector<8x8xf32>, vector<8x8xf32> -> vector<8x8xf32>
    %cst_29 = arith.constant dense<0xFF800000> : vector<8xf32>
    %65 = vector.multi_reduction <maximumf>, %64, %cst_29 [1] : vector<8x8xf32> to vector<8xf32>
    %66 = vector.shape_cast %65 : vector<8xf32> to vector<8x1xf32>
    %67 = vector.broadcast %66 : vector<8x1xf32> to vector<8x8xf32>
    %68 = arith.subf %64, %67 : vector<8x8xf32>
    %69 = math.exp %68 : vector<8x8xf32>
    %cst_30 = arith.constant dense<0.000000e+00> : vector<8xf32>
    %70 = vector.multi_reduction <add>, %69, %cst_30 [1] : vector<8x8xf32> to vector<8xf32>
    %71 = vector.shape_cast %70 : vector<8xf32> to vector<8x1xf32>
    %72 = vector.broadcast %71 : vector<8x1xf32> to vector<8x8xf32>
    %73 = arith.divf %69, %72 : vector<8x8xf32>
    %cst_31 = arith.constant dense<0.000000e+00> : vector<8x8xf32>
    %74 = tpu.matmul %73, %63, %cst_31 {dimension_numbers = #tpu.dot_dimension_numbers<[1], [0], [0], [1], [0, 0, 1, 1], [], []>} : vector<8x8xf32>, vector<8x8xf32>, vector<8x8xf32> -> vector<8x8xf32>
    %75 = vector.extract_strided_slice %8 {offsets = [24, 0], sizes = [8, 32], strides = [1, 1]} : vector<32x32xf32> to vector<8x32xf32>
    %cst_32 = arith.constant dense<0.000000e+00> : vector<8x32xf32>
    %76 = tpu.matmul %74, %75, %cst_32 {dimension_numbers = #tpu.dot_dimension_numbers<[1], [0], [0], [1], [0, 0, 1, 1], [], []>} : vector<8x8xf32>, vector<8x32xf32>, vector<8x32xf32> -> vector<8x32xf32>
    %77 = arith.addf %60, %76 : vector<8x32xf32>
    %cst_33 = arith.constant 0.000000e+00 : f32
    %78 = vector.broadcast %cst_33 : f32 to vector<8x32xf32>
    %79 = vector.extract_strided_slice %3 {offsets = [8, 0], sizes = [8, 8], strides = [1, 1]} : vector<16x32xf32> to vector<8x8xf32>
    %80 = vector.extract_strided_slice %5 {offsets = [8, 0], sizes = [8, 8], strides = [1, 1]} : vector<16x32xf32> to vector<8x8xf32>
    %81 = vector.extract_strided_slice %7 {offsets = [8, 0], sizes = [8, 8], strides = [1, 1]} : vector<16x32xf32> to vector<8x8xf32>
    %cst_34 = arith.constant dense<0.000000e+00> : vector<8x8xf32>
    %82 = tpu.matmul %79, %80, %cst_34 {dimension_numbers = #tpu.dot_dimension_numbers<[1], [1], [0], [0], [0, 0, 1, 0], [], []>} : vector<8x8xf32>, vector<8x8xf32>, vector<8x8xf32> -> vector<8x8xf32>
    %cst_35 = arith.constant dense<0xFF800000> : vector<8xf32>
    %83 = vector.multi_reduction <maximumf>, %82, %cst_35 [1] : vector<8x8xf32> to vector<8xf32>
    %84 = vector.shape_cast %83 : vector<8xf32> to vector<8x1xf32>
    %85 = vector.broadcast %84 : vector<8x1xf32> to vector<8x8xf32>
    %86 = arith.subf %82, %85 : vector<8x8xf32>
    %87 = math.exp %86 : vector<8x8xf32>
    %cst_36 = arith.constant dense<0.000000e+00> : vector<8xf32>
    %88 = vector.multi_reduction <add>, %87, %cst_36 [1] : vector<8x8xf32> to vector<8xf32>
    %89 = vector.shape_cast %88 : vector<8xf32> to vector<8x1xf32>
    %90 = vector.broadcast %89 : vector<8x1xf32> to vector<8x8xf32>
    %91 = arith.divf %87, %90 : vector<8x8xf32>
    %cst_37 = arith.constant dense<0.000000e+00> : vector<8x8xf32>
    %92 = tpu.matmul %91, %81, %cst_37 {dimension_numbers = #tpu.dot_dimension_numbers<[1], [0], [0], [1], [0, 0, 1, 1], [], []>} : vector<8x8xf32>, vector<8x8xf32>, vector<8x8xf32> -> vector<8x8xf32>
    %93 = vector.extract_strided_slice %8 {offsets = [0, 0], sizes = [8, 32], strides = [1, 1]} : vector<32x32xf32> to vector<8x32xf32>
    %cst_38 = arith.constant dense<0.000000e+00> : vector<8x32xf32>
    %94 = tpu.matmul %92, %93, %cst_38 {dimension_numbers = #tpu.dot_dimension_numbers<[1], [0], [0], [1], [0, 0, 1, 1], [], []>} : vector<8x8xf32>, vector<8x32xf32>, vector<8x32xf32> -> vector<8x32xf32>
    %95 = arith.addf %78, %94 : vector<8x32xf32>
    %96 = vector.extract_strided_slice %3 {offsets = [8, 8], sizes = [8, 8], strides = [1, 1]} : vector<16x32xf32> to vector<8x8xf32>
    %97 = vector.extract_strided_slice %5 {offsets = [8, 8], sizes = [8, 8], strides = [1, 1]} : vector<16x32xf32> to vector<8x8xf32>
    %98 = vector.extract_strided_slice %7 {offsets = [8, 8], sizes = [8, 8], strides = [1, 1]} : vector<16x32xf32> to vector<8x8xf32>
    %cst_39 = arith.constant dense<0.000000e+00> : vector<8x8xf32>
    %99 = tpu.matmul %96, %97, %cst_39 {dimension_numbers = #tpu.dot_dimension_numbers<[1], [1], [0], [0], [0, 0, 1, 0], [], []>} : vector<8x8xf32>, vector<8x8xf32>, vector<8x8xf32> -> vector<8x8xf32>
    %cst_40 = arith.constant dense<0xFF800000> : vector<8xf32>
    %100 = vector.multi_reduction <maximumf>, %99, %cst_40 [1] : vector<8x8xf32> to vector<8xf32>
    %101 = vector.shape_cast %100 : vector<8xf32> to vector<8x1xf32>
    %102 = vector.broadcast %101 : vector<8x1xf32> to vector<8x8xf32>
    %103 = arith.subf %99, %102 : vector<8x8xf32>
    %104 = math.exp %103 : vector<8x8xf32>
    %cst_41 = arith.constant dense<0.000000e+00> : vector<8xf32>
    %105 = vector.multi_reduction <add>, %104, %cst_41 [1] : vector<8x8xf32> to vector<8xf32>
    %106 = vector.shape_cast %105 : vector<8xf32> to vector<8x1xf32>
    %107 = vector.broadcast %106 : vector<8x1xf32> to vector<8x8xf32>
    %108 = arith.divf %104, %107 : vector<8x8xf32>
    %cst_42 = arith.constant dense<0.000000e+00> : vector<8x8xf32>
    %109 = tpu.matmul %108, %98, %cst_42 {dimension_numbers = #tpu.dot_dimension_numbers<[1], [0], [0], [1], [0, 0, 1, 1], [], []>} : vector<8x8xf32>, vector<8x8xf32>, vector<8x8xf32> -> vector<8x8xf32>
    %110 = vector.extract_strided_slice %8 {offsets = [8, 0], sizes = [8, 32], strides = [1, 1]} : vector<32x32xf32> to vector<8x32xf32>
    %cst_43 = arith.constant dense<0.000000e+00> : vector<8x32xf32>
    %111 = tpu.matmul %109, %110, %cst_43 {dimension_numbers = #tpu.dot_dimension_numbers<[1], [0], [0], [1], [0, 0, 1, 1], [], []>} : vector<8x8xf32>, vector<8x32xf32>, vector<8x32xf32> -> vector<8x32xf32>
    %112 = arith.addf %95, %111 : vector<8x32xf32>
    %113 = vector.extract_strided_slice %3 {offsets = [8, 16], sizes = [8, 8], strides = [1, 1]} : vector<16x32xf32> to vector<8x8xf32>
    %114 = vector.extract_strided_slice %5 {offsets = [8, 16], sizes = [8, 8], strides = [1, 1]} : vector<16x32xf32> to vector<8x8xf32>
    %115 = vector.extract_strided_slice %7 {offsets = [8, 16], sizes = [8, 8], strides = [1, 1]} : vector<16x32xf32> to vector<8x8xf32>
    %cst_44 = arith.constant dense<0.000000e+00> : vector<8x8xf32>
    %116 = tpu.matmul %113, %114, %cst_44 {dimension_numbers = #tpu.dot_dimension_numbers<[1], [1], [0], [0], [0, 0, 1, 0], [], []>} : vector<8x8xf32>, vector<8x8xf32>, vector<8x8xf32> -> vector<8x8xf32>
    %cst_45 = arith.constant dense<0xFF800000> : vector<8xf32>
    %117 = vector.multi_reduction <maximumf>, %116, %cst_45 [1] : vector<8x8xf32> to vector<8xf32>
    %118 = vector.shape_cast %117 : vector<8xf32> to vector<8x1xf32>
    %119 = vector.broadcast %118 : vector<8x1xf32> to vector<8x8xf32>
    %120 = arith.subf %116, %119 : vector<8x8xf32>
    %121 = math.exp %120 : vector<8x8xf32>
    %cst_46 = arith.constant dense<0.000000e+00> : vector<8xf32>
    %122 = vector.multi_reduction <add>, %121, %cst_46 [1] : vector<8x8xf32> to vector<8xf32>
    %123 = vector.shape_cast %122 : vector<8xf32> to vector<8x1xf32>
    %124 = vector.broadcast %123 : vector<8x1xf32> to vector<8x8xf32>
    %125 = arith.divf %121, %124 : vector<8x8xf32>
    %cst_47 = arith.constant dense<0.000000e+00> : vector<8x8xf32>
    %126 = tpu.matmul %125, %115, %cst_47 {dimension_numbers = #tpu.dot_dimension_numbers<[1], [0], [0], [1], [0, 0, 1, 1], [], []>} : vector<8x8xf32>, vector<8x8xf32>, vector<8x8xf32> -> vector<8x8xf32>
    %127 = vector.extract_strided_slice %8 {offsets = [16, 0], sizes = [8, 32], strides = [1, 1]} : vector<32x32xf32> to vector<8x32xf32>
    %cst_48 = arith.constant dense<0.000000e+00> : vector<8x32xf32>
    %128 = tpu.matmul %126, %127, %cst_48 {dimension_numbers = #tpu.dot_dimension_numbers<[1], [0], [0], [1], [0, 0, 1, 1], [], []>} : vector<8x8xf32>, vector<8x32xf32>, vector<8x32xf32> -> vector<8x32xf32>
    %129 = arith.addf %112, %128 : vector<8x32xf32>
    %130 = vector.extract_strided_slice %3 {offsets = [8, 24], sizes = [8, 8], strides = [1, 1]} : vector<16x32xf32> to vector<8x8xf32>
    %131 = vector.extract_strided_slice %5 {offsets = [8, 24], sizes = [8, 8], strides = [1, 1]} : vector<16x32xf32> to vector<8x8xf32>
    %132 = vector.extract_strided_slice %7 {offsets = [8, 24], sizes = [8, 8], strides = [1, 1]} : vector<16x32xf32> to vector<8x8xf32>
    %cst_49 = arith.constant dense<0.000000e+00> : vector<8x8xf32>
    %133 = tpu.matmul %130, %131, %cst_49 {dimension_numbers = #tpu.dot_dimension_numbers<[1], [1], [0], [0], [0, 0, 1, 0], [], []>} : vector<8x8xf32>, vector<8x8xf32>, vector<8x8xf32> -> vector<8x8xf32>
    %cst_50 = arith.constant dense<0xFF800000> : vector<8xf32>
    %134 = vector.multi_reduction <maximumf>, %133, %cst_50 [1] : vector<8x8xf32> to vector<8xf32>
    %135 = vector.shape_cast %134 : vector<8xf32> to vector<8x1xf32>
    %136 = vector.broadcast %135 : vector<8x1xf32> to vector<8x8xf32>
    %137 = arith.subf %133, %136 : vector<8x8xf32>
    %138 = math.exp %137 : vector<8x8xf32>
    %cst_51 = arith.constant dense<0.000000e+00> : vector<8xf32>
    %139 = vector.multi_reduction <add>, %138, %cst_51 [1] : vector<8x8xf32> to vector<8xf32>
    %140 = vector.shape_cast %139 : vector<8xf32> to vector<8x1xf32>
    %141 = vector.broadcast %140 : vector<8x1xf32> to vector<8x8xf32>
    %142 = arith.divf %138, %141 : vector<8x8xf32>
    %cst_52 = arith.constant dense<0.000000e+00> : vector<8x8xf32>
    %143 = tpu.matmul %142, %132, %cst_52 {dimension_numbers = #tpu.dot_dimension_numbers<[1], [0], [0], [1], [0, 0, 1, 1], [], []>} : vector<8x8xf32>, vector<8x8xf32>, vector<8x8xf32> -> vector<8x8xf32>
    %144 = vector.extract_strided_slice %8 {offsets = [24, 0], sizes = [8, 32], strides = [1, 1]} : vector<32x32xf32> to vector<8x32xf32>
    %cst_53 = arith.constant dense<0.000000e+00> : vector<8x32xf32>
    %145 = tpu.matmul %143, %144, %cst_53 {dimension_numbers = #tpu.dot_dimension_numbers<[1], [0], [0], [1], [0, 0, 1, 1], [], []>} : vector<8x8xf32>, vector<8x32xf32>, vector<8x32xf32> -> vector<8x32xf32>
    %146 = arith.addf %129, %145 : vector<8x32xf32>
    %147 = tpu.concatenate %77, %146 in 0 : vector<8x32xf32>, vector<8x32xf32> -> vector<16x32xf32>
    %c0_54 = arith.constant 0 : index
    %c0_55 = arith.constant 0 : index
    %148 = vector.load %arg6[%c0_54, %c0_55] : memref<1x32xf32, #tpu.memory_space<vmem>>, vector<1x32xf32>
    %149 = vector.broadcast %148 : vector<1x32xf32> to vector<16x32xf32>
    %150 = arith.addf %147, %149 : vector<16x32xf32>
    %c0_56 = arith.constant 0 : index
    %c0_57 = arith.constant 0 : index
    %151 = vector.load %arg7[%c0_56, %c0_57] : memref<32x32xf32, #tpu.memory_space<vmem>>, vector<32x32xf32>
    %cst_58 = arith.constant dense<0.000000e+00> : vector<16x32xf32>
    %152 = tpu.matmul %150, %151, %cst_58 {dimension_numbers = #tpu.dot_dimension_numbers<[1], [0], [0], [1], [0, 0, 1, 1], [], []>} : vector<16x32xf32>, vector<32x32xf32>, vector<16x32xf32> -> vector<16x32xf32>
    %c0_59 = arith.constant 0 : index
    %c0_60 = arith.constant 0 : index
    %153 = vector.load %arg8[%c0_59, %c0_60] : memref<1x32xf32, #tpu.memory_space<vmem>>, vector<1x32xf32>
    %154 = vector.broadcast %153 : vector<1x32xf32> to vector<16x32xf32>
    %155 = arith.addf %152, %154 : vector<16x32xf32>
    %c0_61 = arith.constant 0 : index
    %c0_62 = arith.constant 0 : index
    %c0_63 = arith.constant 0 : index
    %156 = vector.load %arg9[%c0_61, %c0_62, %c0_63] : memref<1x32x128xf32, #tpu.memory_space<vmem>>, vector<1x32x128xf32>
    %157 = vector.shape_cast %156 : vector<1x32x128xf32> to vector<32x128xf32>
    %cst_64 = arith.constant dense<0.000000e+00> : vector<16x128xf32>
    %158 = tpu.matmul %155, %157, %cst_64 {dimension_numbers = #tpu.dot_dimension_numbers<[1], [0], [0], [1], [0, 0, 1, 1], [], []>} : vector<16x32xf32>, vector<32x128xf32>, vector<16x128xf32> -> vector<16x128xf32>
    %c0_65 = arith.constant 0 : index
    %c0_66 = arith.constant 0 : index
    %c0_67 = arith.constant 0 : index
    %159 = vector.load %arg11[%c0_65, %c0_66, %c0_67] : memref<1x1x128xf32, #tpu.memory_space<vmem>>, vector<1x1x128xf32>
    %160 = vector.shape_cast %159 : vector<1x1x128xf32> to vector<1x128xf32>
    %161 = vector.broadcast %160 : vector<1x128xf32> to vector<16x128xf32>
    %162 = arith.addf %158, %161 : vector<16x128xf32>
    %163 = vector.shape_cast %162 : vector<16x128xf32> to vector<2x8x128xf32>
    %c0_68 = arith.constant 0 : index
    %c0_69 = arith.constant 0 : index
    %164 = vector.load %arg12[%c0_68, %c0_69] : memref<1x128xf32, #tpu.memory_space<vmem>>, vector<1x128xf32>
    %cst_70 = arith.constant 1.000000e+00 : f32
    %165 = vector.broadcast %cst_70 : f32 to vector<1x128xf32>
    %166 = arith.subf %165, %164 : vector<1x128xf32>
    %c0_71 = arith.constant 0 : index
    %c0_72 = arith.constant 0 : index
    %c0_73 = arith.constant 0 : index
    %167 = vector.load %arg10[%c0_71, %c0_72, %c0_73] : memref<1x32x128xf32, #tpu.memory_space<vmem>>, vector<1x32x128xf32>
    %168 = vector.shape_cast %167 : vector<1x32x128xf32> to vector<32x128xf32>
    %cst_74 = arith.constant 0.000000e+00 : f32
    %169 = vector.broadcast %cst_74 : f32 to vector<2x32xf32>
    %cst_75 = arith.constant 0.000000e+00 : f32
    %170 = vector.broadcast %cst_75 : f32 to vector<2x32xf32>
    %171 = vector.extract_strided_slice %163 {offsets = [0, 0, 0], sizes = [2, 1, 128], strides = [1, 1, 1]} : vector<2x8x128xf32> to vector<2x1x128xf32>
    %172 = vector.shape_cast %171 : vector<2x1x128xf32> to vector<2x128xf32>
    %cst_76 = arith.constant dense<0.000000e+00> : vector<2x128xf32>
    %173 = tpu.matmul %169, %168, %cst_76 {dimension_numbers = #tpu.dot_dimension_numbers<[1], [0], [0], [1], [0, 0, 1, 1], [], []>} : vector<2x32xf32>, vector<32x128xf32>, vector<2x128xf32> -> vector<2x128xf32>
    %174 = arith.addf %172, %173 : vector<2x128xf32>
    %175 = vector.broadcast %164 : vector<1x128xf32> to vector<2x128xf32>
    %176 = arith.mulf %175, %174 : vector<2x128xf32>
    %177 = math.tanh %176 : vector<2x128xf32>
    %178 = vector.broadcast %164 : vector<1x128xf32> to vector<2x128xf32>
    %179 = arith.mulf %178, %177 : vector<2x128xf32>
    %180 = vector.broadcast %166 : vector<1x128xf32> to vector<2x128xf32>
    %181 = arith.addf %179, %180 : vector<2x128xf32>
    %182 = vector.extract_strided_slice %181 {offsets = [0, 0], sizes = [2, 32], strides = [1, 1]} : vector<2x128xf32> to vector<2x32xf32>
    %183 = vector.extract_strided_slice %181 {offsets = [0, 32], sizes = [2, 32], strides = [1, 1]} : vector<2x128xf32> to vector<2x32xf32>
    %184 = vector.extract_strided_slice %181 {offsets = [0, 64], sizes = [2, 32], strides = [1, 1]} : vector<2x128xf32> to vector<2x32xf32>
    %185 = vector.extract_strided_slice %181 {offsets = [0, 96], sizes = [2, 32], strides = [1, 1]} : vector<2x128xf32> to vector<2x32xf32>
    %186 = arith.mulf %183, %170 : vector<2x32xf32>
    %187 = arith.mulf %182, %184 : vector<2x32xf32>
    %188 = arith.addf %186, %187 : vector<2x32xf32>
    %189 = math.tanh %188 : vector<2x32xf32>
    %190 = arith.mulf %185, %189 : vector<2x32xf32>
    %c0_77 = arith.constant 0 : index
    %c0_78 = arith.constant 0 : index
    %c0_79 = arith.constant 0 : index
    %191 = vector.load %arg16[%c0_77, %c0_78, %c0_79] : memref<2x7x32xf32, #tpu.memory_space<vmem>>, vector<2x1x32xf32>
    %192 = vector.shape_cast %191 : vector<2x1x32xf32> to vector<2x32xf32>
    %193 = vector.shape_cast %190 : vector<2x32xf32> to vector<2x1x32xf32>
    tpu.vector_store %arg16[%c0_77, %c0_78, %c0_79], %193 {strides = array<i32>} : memref<2x7x32xf32, #tpu.memory_space<vmem>>, vector<2x1x32xf32>,
    %194 = vector.extract_strided_slice %163 {offsets = [0, 1, 0], sizes = [2, 1, 128], strides = [1, 1, 1]} : vector<2x8x128xf32> to vector<2x1x128xf32>
    %195 = vector.shape_cast %194 : vector<2x1x128xf32> to vector<2x128xf32>
    %cst_80 = arith.constant dense<0.000000e+00> : vector<2x128xf32>
    %196 = tpu.matmul %190, %168, %cst_80 {dimension_numbers = #tpu.dot_dimension_numbers<[1], [0], [0], [1], [0, 0, 1, 1], [], []>} : vector<2x32xf32>, vector<32x128xf32>, vector<2x128xf32> -> vector<2x128xf32>
    %197 = arith.addf %195, %196 : vector<2x128xf32>
    %198 = vector.broadcast %164 : vector<1x128xf32> to vector<2x128xf32>
    %199 = arith.mulf %198, %197 : vector<2x128xf32>
    %200 = math.tanh %199 : vector<2x128xf32>
    %201 = vector.broadcast %164 : vector<1x128xf32> to vector<2x128xf32>
    %202 = arith.mulf %201, %200 : vector<2x128xf32>
    %203 = vector.broadcast %166 : vector<1x128xf32> to vector<2x128xf32>
    %204 = arith.addf %202, %203 : vector<2x128xf32>
    %205 = vector.extract_strided_slice %204 {offsets = [0, 0], sizes = [2, 32], strides = [1, 1]} : vector<2x128xf32> to vector<2x32xf32>
    %206 = vector.extract_strided_slice %204 {offsets = [0, 32], sizes = [2, 32], strides = [1, 1]} : vector<2x128xf32> to vector<2x32xf32>
    %207 = vector.extract_strided_slice %204 {offsets = [0, 64], sizes = [2, 32], strides = [1, 1]} : vector<2x128xf32> to vector<2x32xf32>
    %208 = vector.extract_strided_slice %204 {offsets = [0, 96], sizes = [2, 32], strides = [1, 1]} : vector<2x128xf32> to vector<2x32xf32>
    %209 = arith.mulf %206, %188 : vector<2x32xf32>
    %210 = arith.mulf %205, %207 : vector<2x32xf32>
    %211 = arith.addf %209, %210 : vector<2x32xf32>
    %212 = math.tanh %211 : vector<2x32xf32>
    %213 = arith.mulf %208, %212 : vector<2x32xf32>
    %c0_81 = arith.constant 0 : index
    %c1 = arith.constant 1 : index
    %c0_82 = arith.constant 0 : index
    %214 = vector.load %arg16[%c0_81, %c1, %c0_82] : memref<2x7x32xf32, #tpu.memory_space<vmem>>, vector<2x1x32xf32>
    %215 = vector.shape_cast %214 : vector<2x1x32xf32> to vector<2x32xf32>
    %216 = vector.shape_cast %213 : vector<2x32xf32> to vector<2x1x32xf32>
    tpu.vector_store %arg16[%c0_81, %c1, %c0_82], %216 {strides = array<i32>} : memref<2x7x32xf32, #tpu.memory_space<vmem>>, vector<2x1x32xf32>,
    %217 = vector.extract_strided_slice %163 {offsets = [0, 2, 0], sizes = [2, 1, 128], strides = [1, 1, 1]} : vector<2x8x128xf32> to vector<2x1x128xf32>
    %218 = vector.shape_cast %217 : vector<2x1x128xf32> to vector<2x128xf32>
    %cst_83 = arith.constant dense<0.000000e+00> : vector<2x128xf32>
    %219 = tpu.matmul %213, %168, %cst_83 {dimension_numbers = #tpu.dot_dimension_numbers<[1], [0], [0], [1], [0, 0, 1, 1], [], []>} : vector<2x32xf32>, vector<32x128xf32>, vector<2x128xf32> -> vector<2x128xf32>
    %220 = arith.addf %218, %219 : vector<2x128xf32>
    %221 = vector.broadcast %164 : vector<1x128xf32> to vector<2x128xf32>
    %222 = arith.mulf %221, %220 : vector<2x128xf32>
    %223 = math.tanh %222 : vector<2x128xf32>
    %224 = vector.broadcast %164 : vector<1x128xf32> to vector<2x128xf32>
    %225 = arith.mulf %224, %223 : vector<2x128xf32>
    %226 = vector.broadcast %166 : vector<1x128xf32> to vector<2x128xf32>
    %227 = arith.addf %225, %226 : vector<2x128xf32>
    %228 = vector.extract_strided_slice %227 {offsets = [0, 0], sizes = [2, 32], strides = [1, 1]} : vector<2x128xf32> to vector<2x32xf32>
    %229 = vector.extract_strided_slice %227 {offsets = [0, 32], sizes = [2, 32], strides = [1, 1]} : vector<2x128xf32> to vector<2x32xf32>
    %230 = vector.extract_strided_slice %227 {offsets = [0, 64], sizes = [2, 32], strides = [1, 1]} : vector<2x128xf32> to vector<2x32xf32>
    %231 = vector.extract_strided_slice %227 {offsets = [0, 96], sizes = [2, 32], strides = [1, 1]} : vector<2x128xf32> to vector<2x32xf32>
    %232 = arith.mulf %229, %211 : vector<2x32xf32>
    %233 = arith.mulf %228, %230 : vector<2x32xf32>
    %234 = arith.addf %232, %233 : vector<2x32xf32>
    %235 = math.tanh %234 : vector<2x32xf32>
    %236 = arith.mulf %231, %235 : vector<2x32xf32>
    %c0_84 = arith.constant 0 : index
    %c2 = arith.constant 2 : index
    %c0_85 = arith.constant 0 : index
    %237 = vector.load %arg16[%c0_84, %c2, %c0_85] : memref<2x7x32xf32, #tpu.memory_space<vmem>>, vector<2x1x32xf32>
    %238 = vector.shape_cast %237 : vector<2x1x32xf32> to vector<2x32xf32>
    %239 = vector.shape_cast %236 : vector<2x32xf32> to vector<2x1x32xf32>
    tpu.vector_store %arg16[%c0_84, %c2, %c0_85], %239 {strides = array<i32>} : memref<2x7x32xf32, #tpu.memory_space<vmem>>, vector<2x1x32xf32>,
    %240 = vector.extract_strided_slice %163 {offsets = [0, 3, 0], sizes = [2, 1, 128], strides = [1, 1, 1]} : vector<2x8x128xf32> to vector<2x1x128xf32>
    %241 = vector.shape_cast %240 : vector<2x1x128xf32> to vector<2x128xf32>
    %cst_86 = arith.constant dense<0.000000e+00> : vector<2x128xf32>
    %242 = tpu.matmul %236, %168, %cst_86 {dimension_numbers = #tpu.dot_dimension_numbers<[1], [0], [0], [1], [0, 0, 1, 1], [], []>} : vector<2x32xf32>, vector<32x128xf32>, vector<2x128xf32> -> vector<2x128xf32>
    %243 = arith.addf %241, %242 : vector<2x128xf32>
    %244 = vector.broadcast %164 : vector<1x128xf32> to vector<2x128xf32>
    %245 = arith.mulf %244, %243 : vector<2x128xf32>
    %246 = math.tanh %245 : vector<2x128xf32>
    %247 = vector.broadcast %164 : vector<1x128xf32> to vector<2x128xf32>
    %248 = arith.mulf %247, %246 : vector<2x128xf32>
    %249 = vector.broadcast %166 : vector<1x128xf32> to vector<2x128xf32>
    %250 = arith.addf %248, %249 : vector<2x128xf32>
    %251 = vector.extract_strided_slice %250 {offsets = [0, 0], sizes = [2, 32], strides = [1, 1]} : vector<2x128xf32> to vector<2x32xf32>
    %252 = vector.extract_strided_slice %250 {offsets = [0, 32], sizes = [2, 32], strides = [1, 1]} : vector<2x128xf32> to vector<2x32xf32>
    %253 = vector.extract_strided_slice %250 {offsets = [0, 64], sizes = [2, 32], strides = [1, 1]} : vector<2x128xf32> to vector<2x32xf32>
    %254 = vector.extract_strided_slice %250 {offsets = [0, 96], sizes = [2, 32], strides = [1, 1]} : vector<2x128xf32> to vector<2x32xf32>
    %255 = arith.mulf %252, %234 : vector<2x32xf32>
    %256 = arith.mulf %251, %253 : vector<2x32xf32>
    %257 = arith.addf %255, %256 : vector<2x32xf32>
    %258 = math.tanh %257 : vector<2x32xf32>
    %259 = arith.mulf %254, %258 : vector<2x32xf32>
    %c0_87 = arith.constant 0 : index
    %c3 = arith.constant 3 : index
    %c0_88 = arith.constant 0 : index
    %260 = vector.load %arg16[%c0_87, %c3, %c0_88] : memref<2x7x32xf32, #tpu.memory_space<vmem>>, vector<2x1x32xf32>
    %261 = vector.shape_cast %260 : vector<2x1x32xf32> to vector<2x32xf32>
    %262 = vector.shape_cast %259 : vector<2x32xf32> to vector<2x1x32xf32>
    tpu.vector_store %arg16[%c0_87, %c3, %c0_88], %262 {strides = array<i32>} : memref<2x7x32xf32, #tpu.memory_space<vmem>>, vector<2x1x32xf32>,
    %263 = vector.extract_strided_slice %163 {offsets = [0, 4, 0], sizes = [2, 1, 128], strides = [1, 1, 1]} : vector<2x8x128xf32> to vector<2x1x128xf32>
    %264 = vector.shape_cast %263 : vector<2x1x128xf32> to vector<2x128xf32>
    %cst_89 = arith.constant dense<0.000000e+00> : vector<2x128xf32>
    %265 = tpu.matmul %259, %168, %cst_89 {dimension_numbers = #tpu.dot_dimension_numbers<[1], [0], [0], [1], [0, 0, 1, 1], [], []>} : vector<2x32xf32>, vector<32x128xf32>, vector<2x128xf32> -> vector<2x128xf32>
    %266 = arith.addf %264, %265 : vector<2x128xf32>
    %267 = vector.broadcast %164 : vector<1x128xf32> to vector<2x128xf32>
    %268 = arith.mulf %267, %266 : vector<2x128xf32>
    %269 = math.tanh %268 : vector<2x128xf32>
    %270 = vector.broadcast %164 : vector<1x128xf32> to vector<2x128xf32>
    %271 = arith.mulf %270, %269 : vector<2x128xf32>
    %272 = vector.broadcast %166 : vector<1x128xf32> to vector<2x128xf32>
    %273 = arith.addf %271, %272 : vector<2x128xf32>
    %274 = vector.extract_strided_slice %273 {offsets = [0, 0], sizes = [2, 32], strides = [1, 1]} : vector<2x128xf32> to vector<2x32xf32>
    %275 = vector.extract_strided_slice %273 {offsets = [0, 32], sizes = [2, 32], strides = [1, 1]} : vector<2x128xf32> to vector<2x32xf32>
    %276 = vector.extract_strided_slice %273 {offsets = [0, 64], sizes = [2, 32], strides = [1, 1]} : vector<2x128xf32> to vector<2x32xf32>
    %277 = vector.extract_strided_slice %273 {offsets = [0, 96], sizes = [2, 32], strides = [1, 1]} : vector<2x128xf32> to vector<2x32xf32>
    %278 = arith.mulf %275, %257 : vector<2x32xf32>
    %279 = arith.mulf %274, %276 : vector<2x32xf32>
    %280 = arith.addf %278, %279 : vector<2x32xf32>
    %281 = math.tanh %280 : vector<2x32xf32>
    %282 = arith.mulf %277, %281 : vector<2x32xf32>
    %c0_90 = arith.constant 0 : index
    %c4 = arith.constant 4 : index
    %c0_91 = arith.constant 0 : index
    %283 = vector.load %arg16[%c0_90, %c4, %c0_91] : memref<2x7x32xf32, #tpu.memory_space<vmem>>, vector<2x1x32xf32>
    %284 = vector.shape_cast %283 : vector<2x1x32xf32> to vector<2x32xf32>
    %285 = vector.shape_cast %282 : vector<2x32xf32> to vector<2x1x32xf32>
    tpu.vector_store %arg16[%c0_90, %c4, %c0_91], %285 {strides = array<i32>} : memref<2x7x32xf32, #tpu.memory_space<vmem>>, vector<2x1x32xf32>,
    %286 = vector.extract_strided_slice %163 {offsets = [0, 5, 0], sizes = [2, 1, 128], strides = [1, 1, 1]} : vector<2x8x128xf32> to vector<2x1x128xf32>
    %287 = vector.shape_cast %286 : vector<2x1x128xf32> to vector<2x128xf32>
    %cst_92 = arith.constant dense<0.000000e+00> : vector<2x128xf32>
    %288 = tpu.matmul %282, %168, %cst_92 {dimension_numbers = #tpu.dot_dimension_numbers<[1], [0], [0], [1], [0, 0, 1, 1], [], []>} : vector<2x32xf32>, vector<32x128xf32>, vector<2x128xf32> -> vector<2x128xf32>
    %289 = arith.addf %287, %288 : vector<2x128xf32>
    %290 = vector.broadcast %164 : vector<1x128xf32> to vector<2x128xf32>
    %291 = arith.mulf %290, %289 : vector<2x128xf32>
    %292 = math.tanh %291 : vector<2x128xf32>
    %293 = vector.broadcast %164 : vector<1x128xf32> to vector<2x128xf32>
    %294 = arith.mulf %293, %292 : vector<2x128xf32>
    %295 = vector.broadcast %166 : vector<1x128xf32> to vector<2x128xf32>
    %296 = arith.addf %294, %295 : vector<2x128xf32>
    %297 = vector.extract_strided_slice %296 {offsets = [0, 0], sizes = [2, 32], strides = [1, 1]} : vector<2x128xf32> to vector<2x32xf32>
    %298 = vector.extract_strided_slice %296 {offsets = [0, 32], sizes = [2, 32], strides = [1, 1]} : vector<2x128xf32> to vector<2x32xf32>
    %299 = vector.extract_strided_slice %296 {offsets = [0, 64], sizes = [2, 32], strides = [1, 1]} : vector<2x128xf32> to vector<2x32xf32>
    %300 = vector.extract_strided_slice %296 {offsets = [0, 96], sizes = [2, 32], strides = [1, 1]} : vector<2x128xf32> to vector<2x32xf32>
    %301 = arith.mulf %298, %280 : vector<2x32xf32>
    %302 = arith.mulf %297, %299 : vector<2x32xf32>
    %303 = arith.addf %301, %302 : vector<2x32xf32>
    %304 = math.tanh %303 : vector<2x32xf32>
    %305 = arith.mulf %300, %304 : vector<2x32xf32>
    %c0_93 = arith.constant 0 : index
    %c5 = arith.constant 5 : index
    %c0_94 = arith.constant 0 : index
    %306 = vector.load %arg16[%c0_93, %c5, %c0_94] : memref<2x7x32xf32, #tpu.memory_space<vmem>>, vector<2x1x32xf32>
    %307 = vector.shape_cast %306 : vector<2x1x32xf32> to vector<2x32xf32>
    %308 = vector.shape_cast %305 : vector<2x32xf32> to vector<2x1x32xf32>
    tpu.vector_store %arg16[%c0_93, %c5, %c0_94], %308 {strides = array<i32>} : memref<2x7x32xf32, #tpu.memory_space<vmem>>, vector<2x1x32xf32>,
    %309 = vector.extract_strided_slice %163 {offsets = [0, 6, 0], sizes = [2, 1, 128], strides = [1, 1, 1]} : vector<2x8x128xf32> to vector<2x1x128xf32>
    %310 = vector.shape_cast %309 : vector<2x1x128xf32> to vector<2x128xf32>
    %cst_95 = arith.constant dense<0.000000e+00> : vector<2x128xf32>
    %311 = tpu.matmul %305, %168, %cst_95 {dimension_numbers = #tpu.dot_dimension_numbers<[1], [0], [0], [1], [0, 0, 1, 1], [], []>} : vector<2x32xf32>, vector<32x128xf32>, vector<2x128xf32> -> vector<2x128xf32>
    %312 = arith.addf %310, %311 : vector<2x128xf32>
    %313 = vector.broadcast %164 : vector<1x128xf32> to vector<2x128xf32>
    %314 = arith.mulf %313, %312 : vector<2x128xf32>
    %315 = math.tanh %314 : vector<2x128xf32>
    %316 = vector.broadcast %164 : vector<1x128xf32> to vector<2x128xf32>
    %317 = arith.mulf %316, %315 : vector<2x128xf32>
    %318 = vector.broadcast %166 : vector<1x128xf32> to vector<2x128xf32>
    %319 = arith.addf %317, %318 : vector<2x128xf32>
    %320 = vector.extract_strided_slice %319 {offsets = [0, 0], sizes = [2, 32], strides = [1, 1]} : vector<2x128xf32> to vector<2x32xf32>
    %321 = vector.extract_strided_slice %319 {offsets = [0, 32], sizes = [2, 32], strides = [1, 1]} : vector<2x128xf32> to vector<2x32xf32>
    %322 = vector.extract_strided_slice %319 {offsets = [0, 64], sizes = [2, 32], strides = [1, 1]} : vector<2x128xf32> to vector<2x32xf32>
    %323 = vector.extract_strided_slice %319 {offsets = [0, 96], sizes = [2, 32], strides = [1, 1]} : vector<2x128xf32> to vector<2x32xf32>
    %324 = arith.mulf %321, %303 : vector<2x32xf32>
    %325 = arith.mulf %320, %322 : vector<2x32xf32>
    %326 = arith.addf %324, %325 : vector<2x32xf32>
    %327 = math.tanh %326 : vector<2x32xf32>
    %328 = arith.mulf %323, %327 : vector<2x32xf32>
    %c0_96 = arith.constant 0 : index
    %c6 = arith.constant 6 : index
    %c0_97 = arith.constant 0 : index
    %329 = vector.load %arg16[%c0_96, %c6, %c0_97] : memref<2x7x32xf32, #tpu.memory_space<vmem>>, vector<2x1x32xf32>
    %330 = vector.shape_cast %329 : vector<2x1x32xf32> to vector<2x32xf32>
    %331 = vector.shape_cast %328 : vector<2x32xf32> to vector<2x1x32xf32>
    tpu.vector_store %arg16[%c0_96, %c6, %c0_97], %331 {strides = array<i32>} : memref<2x7x32xf32, #tpu.memory_space<vmem>>, vector<2x1x32xf32>,
    %c0_98 = arith.constant 0 : index
    %c0_99 = arith.constant 0 : index
    %c0_100 = arith.constant 0 : index
    %332 = vector.load %arg16[%c0_98, %c0_99, %c0_100] : memref<2x7x32xf32, #tpu.memory_space<vmem>>, vector<2x7x32xf32>
    %333 = vector.shape_cast %332 : vector<2x7x32xf32> to vector<14x32xf32>
    %cst_101 = arith.constant 0.000000e+00 : f32
    %334 = vector.broadcast %cst_101 : f32 to vector<14x32xf32>
    %335 = arith.maximumf %333, %334 : vector<14x32xf32>
    %c0_102 = arith.constant 0 : index
    %c0_103 = arith.constant 0 : index
    %336 = vector.load %arg13[%c0_102, %c0_103] : memref<32x4xf32, #tpu.memory_space<vmem>>, vector<32x4xf32>
    %cst_104 = arith.constant dense<0.000000e+00> : vector<14x4xf32>
    %337 = tpu.matmul %335, %336, %cst_104 {dimension_numbers = #tpu.dot_dimension_numbers<[1], [0], [0], [1], [0, 0, 1, 1], [], []>} : vector<14x32xf32>, vector<32x4xf32>, vector<14x4xf32> -> vector<14x4xf32>
    %c0_105 = arith.constant 0 : index
    %c0_106 = arith.constant 0 : index
    %338 = vector.load %arg14[%c0_105, %c0_106] : memref<1x4xf32, #tpu.memory_space<vmem>>, vector<1x4xf32>
    %339 = vector.broadcast %338 : vector<1x4xf32> to vector<14x4xf32>
    %340 = arith.addf %337, %339 : vector<14x4xf32>
    %341 = vector.shape_cast %340 : vector<14x4xf32> to vector<2x7x4xf32>
    %c0_107 = arith.constant 0 : index
    %c0_108 = arith.constant 0 : index
    %c0_109 = arith.constant 0 : index
    %342 = vector.load %arg15[%c0_107, %c0_108, %c0_109] : memref<2x7x4xf32, #tpu.memory_space<vmem>>, vector<2x7x4xf32>
    tpu.vector_store %arg15[%c0_107, %c0_108, %c0_109], %341 {strides = array<i32>} : memref<2x7x4xf32, #tpu.memory_space<vmem>>, vector<2x7x4xf32>,
    return
  }
  func.func @transform_0(%arg0: i32) -> (i32, i32, i32) {
    %c0_i32 = arith.constant 0 : i32
    %c0_i32_0 = arith.constant 0 : i32
    %c0_i32_1 = arith.constant 0 : i32
    return %arg0, %c0_i32, %c0_i32_0 : i32, i32, i32
  }
  func.func @transform_1(%arg0: i32) -> (i32, i32) {
    %c0_i32 = arith.constant 0 : i32
    %c0_i32_0 = arith.constant 0 : i32
    %c0_i32_1 = arith.constant 0 : i32
    return %c0_i32, %c0_i32_0 : i32, i32
  }
  func.func @transform_2(%arg0: i32) -> (i32, i32) {
    %c0_i32 = arith.constant 0 : i32
    %c0_i32_0 = arith.constant 0 : i32
    %c0_i32_1 = arith.constant 0 : i32
    return %c0_i32, %c0_i32_0 : i32, i32
  }
  func.func @transform_3(%arg0: i32) -> (i32, i32) {
    %c0_i32 = arith.constant 0 : i32
    %c0_i32_0 = arith.constant 0 : i32
    %c0_i32_1 = arith.constant 0 : i32
    return %c0_i32, %c0_i32_0 : i32, i32
  }
  func.func @transform_4(%arg0: i32) -> (i32, i32) {
    %c0_i32 = arith.constant 0 : i32
    %c0_i32_0 = arith.constant 0 : i32
    %c0_i32_1 = arith.constant 0 : i32
    return %c0_i32, %c0_i32_0 : i32, i32
  }
  func.func @transform_5(%arg0: i32) -> (i32, i32) {
    %c0_i32 = arith.constant 0 : i32
    %c0_i32_0 = arith.constant 0 : i32
    %c0_i32_1 = arith.constant 0 : i32
    return %c0_i32, %c0_i32_0 : i32, i32
  }
  func.func @transform_6(%arg0: i32) -> (i32, i32) {
    %c0_i32 = arith.constant 0 : i32
    %c0_i32_0 = arith.constant 0 : i32
    %c0_i32_1 = arith.constant 0 : i32
    return %c0_i32, %c0_i32_0 : i32, i32
  }
  func.func @transform_7(%arg0: i32) -> (i32, i32) {
    %c0_i32 = arith.constant 0 : i32
    %c0_i32_0 = arith.constant 0 : i32
    %c0_i32_1 = arith.constant 0 : i32
    return %c0_i32, %c0_i32_0 : i32, i32
  }
  func.func @transform_8(%arg0: i32) -> (i32, i32, i32) {
    %c0_i32 = arith.constant 0 : i32
    %c0_i32_0 = arith.constant 0 : i32
    %c0_i32_1 = arith.constant 0 : i32
    %c0_i32_2 = arith.constant 0 : i32
    return %c0_i32, %c0_i32_0, %c0_i32_1 : i32, i32, i32
  }
  func.func @transform_9(%arg0: i32) -> (i32, i32, i32) {
    %c0_i32 = arith.constant 0 : i32
    %c0_i32_0 = arith.constant 0 : i32
    %c0_i32_1 = arith.constant 0 : i32
    %c0_i32_2 = arith.constant 0 : i32
    return %c0_i32, %c0_i32_0, %c0_i32_1 : i32, i32, i32
  }
  func.func @transform_10(%arg0: i32) -> (i32, i32, i32) {
    %c0_i32 = arith.constant 0 : i32
    %c0_i32_0 = arith.constant 0 : i32
    %c0_i32_1 = arith.constant 0 : i32
    %c0_i32_2 = arith.constant 0 : i32
    return %c0_i32, %c0_i32_0, %c0_i32_1 : i32, i32, i32
  }
  func.func @transform_11(%arg0: i32) -> (i32, i32) {
    %c0_i32 = arith.constant 0 : i32
    %c0_i32_0 = arith.constant 0 : i32
    %c0_i32_1 = arith.constant 0 : i32
    return %c0_i32, %c0_i32_0 : i32, i32
  }
  func.func @transform_12(%arg0: i32) -> (i32, i32) {
    %c0_i32 = arith.constant 0 : i32
    %c0_i32_0 = arith.constant 0 : i32
    %c0_i32_1 = arith.constant 0 : i32
    return %c0_i32, %c0_i32_0 : i32, i32
  }
  func.func @transform_13(%arg0: i32) -> (i32, i32) {
    %c0_i32 = arith.constant 0 : i32
    %c0_i32_0 = arith.constant 0 : i32
    %c0_i32_1 = arith.constant 0 : i32
    return %c0_i32, %c0_i32_0 : i32, i32
  }
  func.func @transform_14(%arg0: i32) -> (i32, i32, i32) {
    %c0_i32 = arith.constant 0 : i32
    %c0_i32_0 = arith.constant 0 : i32
    %c0_i32_1 = arith.constant 0 : i32
    return %arg0, %c0_i32, %c0_i32_0 : i32, i32, i32
  }
}

</mosaic_0001>

<bundles_post_ra>
// kernel: tpu_custom_call.1
= control target key start
LH: loop header
LB: loop body
LE: loop exit
PB: predicated region body
PF: predicated region fallthrough
CT: control target
= control target key end

     0   :  { %19 = vsyncpa [#allocation4], 0  ;;  %s2540_s0 = inlined_call_operand.hbm [shape: f32[2,8,32], index: 0, kind: input, shape index: {}]   ;;  %s2541_s1 = inlined_call_operand.vmem [shape: f32[32,32], index: 1, kind: input, shape index: {}]   ;;  %s2542_s2 = inlined_call_operand.hbm [shape: f32[32,32], index: 2, kind: input, shape index: {}]   ;;  %s2543_s3 = inlined_call_operand.hbm [shape: f32[32,32], index: 3, kind: input, shape index: {}]   ;;  %s2544_s4 = inlined_call_operand.hbm [shape: f32[32,32], index: 4, kind: input, shape index: {}]   ;;  %s2545_s5 = inlined_call_operand.vmem [shape: f32[1,32], index: 5, kind: input, shape index: {}]   ;;  %s2546_s6 = inlined_call_operand.hbm [shape: f32[32,32], index: 6, kind: input, shape index: {}]   ;;  %s2547_s7 = inlined_call_operand.vmem [shape: f32[1,32], index: 7, kind: input, shape index: {}]   ;;  %s2548_s8 = inlined_call_operand.hbm [shape: f32[1,32,128], index: 8, kind: input, shape index: {}]   ;;  %s2549_s9 = inlined_call_operand.hbm [shape: f32[1,32,128], index: 9, kind: input, shape index: {}]   ;;  %s2550_s10 = inlined_call_operand.vmem [shape: f32[1,1,128], index: 10, kind: input, shape index: {}]   ;;  %s2551_s11 = inlined_call_operand.vmem [shape: f32[1,128], index: 11, kind: input, shape index: {}]   ;;  %s2552_s12 = inlined_call_operand.vmem [shape: f32[32,4], index: 12, kind: input, shape index: {}]   ;;  %s2553_s13 = inlined_call_operand.vmem [shape: f32[1,4], index: 13, kind: input, shape index: {}]   ;;  %s2554_s14 = inlined_call_operand.vmem [shape: f32[2,7,4], index: 14, kind: output, shape index: {}]  }
   0x1   :  { %20 = vsyncpa [#allocation6], 0 }
   0x2   :  { %21 = vsyncpa [#allocation9], 0 }
   0x3   :  { %22 = vsyncpa [#allocation12], 0  ;;  %s42_s15 = sshll.u32 %s2542_s2, 4  ;;  %s2107_s16 = smov [#allocation5]   ;;  %s43_s15 = int_to_ptr.hbm [resolvable:$true] %s42_s15 }
   0x4   :  { %s44_s17 = sshll.u32 %s2107_s16, 4  ;;  %s68_s20 = sshll.u32 %s2544_s4, 4  ;;  %s45_s17 = int_to_ptr.vmem [resolvable:$true] %s44_s17  ;;  %s69_s20 = int_to_ptr.hbm [resolvable:$true] %s68_s20 }
   0x5   :  { %s2108_s21 = smov 128   ;;  %s2109_s22 = smov 8  }
   0x6   :  { %50 = dma.hbm_to_vmem [thread:$0]  %s43_s15, 512, %s45_s17, [#allocation6], %s2108_s21, %s2108_s21, %s2109_s22  }
   0x7   :  { %s2110_s23 = smov [#allocation8]   ;;  %s98_s2 = sshll.u32 %s2548_s8, 4  ;;  %s99_s2 = int_to_ptr.hbm [resolvable:$true] %s98_s2 }
   0x8   :  { %s70_s24 = sshll.u32 %s2110_s23, 4  ;;  %s27_s28 = sshll.u32 %s2540_s0, 4  ;;  %s71_s24 = int_to_ptr.vmem [resolvable:$true] %s70_s24  ;;  %s28_s28 = int_to_ptr.hbm [resolvable:$true] %s27_s28 }
   0x9   :  { %76 = dma.hbm_to_vmem [thread:$0]  %s69_s20, 512, %s71_s24, [#allocation9], %s2108_s21, %s2108_s21, %s2109_s22  }
   0xa   :  { %s2111_s29 = smov [#allocation11]   ;;  %s2112_s15 = smov [#allocation3]  }
   0xb   :  { %s100_s30 = sshll.u32 %s2111_s29, 4  ;;  %s29_s8 = sshll.u32 %s2112_s15, 4  ;;  %s101_s30 = int_to_ptr.vmem [resolvable:$true] %s100_s30  ;;  %s30_s8 = int_to_ptr.vmem [resolvable:$true] %s29_s8 }
   0xc   :  { %106 = dma.hbm_to_vmem [thread:$0]  %s99_s2, 512, %s101_s30, [#allocation12], %s2108_s21, %s2108_s21, %s2109_s22  }
   0xd   :  { %s55_s18 = sshll.u32 %s2543_s3, 4  ;;  %s83_s20 = sshll.u32 %s2546_s6, 4  ;;  %s56_s18 = int_to_ptr.hbm [resolvable:$true] %s55_s18  ;;  %s84_s20 = int_to_ptr.hbm [resolvable:$true] %s83_s20 }
   0xe   :  { %35 = dma.hbm_to_vmem [thread:$0]  %s28_s28, 256, %s30_s8, [#allocation4], %s2108_s21, %s2108_s21, %s2109_s22  }
   0xf   :  { %s2113_s23 = smov [#allocation7]   ;;  %s2114_s25 = smov [#allocation10]  }
  0x10   :  { %s57_s24 = sshll.u32 %s2113_s23, 4  ;;  %s85_s3 = sshll.u32 %s2114_s25, 4  ;;  %s58_s24 = int_to_ptr.vmem [resolvable:$true] %s57_s24  ;;  %s86_s3 = int_to_ptr.vmem [resolvable:$true] %s85_s3 }
  0x11   :  { %63 = dma.hbm_to_vmem [thread:$0]  %s56_s18, 512, %s58_s24, [#allocation6], %s2108_s21, %s2108_s21, %s2109_s22  }
  0x12   :  { %s111_s4 = sshll.u32 %s2549_s9, 4  ;;  %s2115_s6 = smov [#allocation13]   ;;  %s112_s4 = int_to_ptr.hbm [resolvable:$true] %s111_s4 }
  0x13   :  { %91 = dma.hbm_to_vmem [thread:$0]  %s84_s20, 512, %s86_s3, [#allocation9], %s2108_s21, %s2108_s21, %s2109_s22  }
  0x14   :  { %s113_s27 = sshll.u32 %s2115_s6, 4  ;;  %s114_s27 = int_to_ptr.vmem [resolvable:$true] %s113_s27 }
  0x15   :  { %119 = dma.hbm_to_vmem [thread:$0]  %s112_s4, 512, %s114_s27, [#allocation12], %s2108_s21, %s2108_s21, %s2109_s22  }
  0x16   :  { %2099 = dma.done.wait [#allocation4], 256  }
  0x17   :  { %2100 = vsyncadd [#allocation4], 4294967040 }
  0x18   :  { %2101 = dma.done.wait [#allocation6], 1024  }
  0x19   :  { %2102 = vsyncadd [#allocation6], 4294966272 }
  0x1a   :  { %2103 = dma.done.wait [#allocation9], 1024  }
  0x1b   :  { %2104 = vsyncadd [#allocation9], 4294966272 }
  0x1c   :  { %2105 = dma.done.wait [#allocation12], 1024  }
  0x1d   :  { %2106 = vsyncadd [#allocation12], 4294966272  ;;  %v161_v0 = vld [vmem:[%s2541_s1 + $0x18] sm:$0xff]  ;;  %v160_v1 = vld [vmem:[%s2541_s1 + $0x10] sm:$0xff]  ;;  %vm162_vm0 = vcmask 261120   ;;  %vm250_vm1 = vcmask 64512  }
  0x1e   :  { %1847 = vmatpush.msra.mxu1 %v161_v0  ;;  %181 = vmatpush.msra.mxu0 %v161_v0  ;;  %v159_v2 = vld [vmem:[%s2541_s1 + $0x8] sm:$0xff]  ;;  %v222_v3 = vld [vmem:[#allocation7 + $0x18] sm:$0xff]  ;;  %v221_v4 = vld [vmem:[#allocation7 + $0x10] sm:$0xff]  ;;  %s2117_s16 = smov 120   ;;  %s2118_s17 = smov 104  }
  0x1f   :  { %v158_v5 = vld [vmem:[%s2541_s1] sm:$0xff]  ;;  %235 = vmatpush.msra.mxu2 %v222_v3  ;;  %v220_v8 = vld [vmem:[#allocation7 + $0x8] sm:$0xff]  ;;  %v156_v9 = vld [vmem:[#allocation3] sm:$0xff]  ;;  %s2116_s1 = smov 112   ;;  %s2120_s3 = smov 64  }
  0x20   :  { %1848 = vmatpush.msra.mxu1 %v160_v1  ;;  %182 = vmatpush.msra.mxu0 %v160_v1  ;;  %v157_v6 = vld [vmem:[#allocation3 + $0x8] sm:$0xff]  ;;  %v194_v10 = vld [vmem:[#allocation5 + $0x10] sm:$0xff]  ;;  %v219_v11 = vld [vmem:[#allocation7] sm:$0xff]  ;;  %s2121_s26 = smov 32  }
  0x21   :  { %v195_v7 = vld [vmem:[#allocation5 + $0x18] sm:$0xff]  ;;  %236 = vmatpush.msra.mxu2 %v221_v4  ;;  %v193_v12 = vld [vmem:[#allocation5 + $0x8] sm:$0xff]  ;;  %v192_v13 = vld [vmem:[#allocation5] sm:$0xff] }
  0x22   :  { %1849 = vmatpush.msra.mxu1 %v159_v2  ;;  %183 = vmatpush.msra.mxu0 %v159_v2  ;;  %v246_v41 = vld [vmem:[#allocation8] sm:$0xff]  ;;  %v247_v58 = vld [vmem:[#allocation8 + $0x8] sm:$0xff] }
  0x23   :  { %237 = vmatpush.msra.mxu2 %v220_v8 }
  0x24   :  { %1850 = vmatpush.msra.mxu1 %v158_v5  ;;  %184 = vmatpush.msra.mxu0 %v158_v5 }
  0x25   :  { %1798 = vmatmul.msk.f32.vlgmr.msra.gmra.mxu1 %vm162_vm0, %v157_v6  ;;  %1797 = vmatmul.msk.f32.vlgmr.msra.gmra.mxu0 %vm162_vm0, %v156_v9 }
  0x26   :  { %208 = vmatpush.msrb.mxu1 %v195_v7  ;;  %238 = vmatpush.msra.mxu2 %v219_v11 }
  0x27   :  { %1801 = vmatmul.msk.f32.vlgmr.msra.gmra.mxu2 %vm162_vm0, %v156_v9 }
  0x28   :  { %209 = vmatpush.msrb.mxu1 %v194_v10  ;;  %444 = vmatpush.msrb.mxu2 %v246_v41 }
  0x2a   :  { %210 = vmatpush.msrb.mxu1 %v193_v12 }
  0x2c   :  { %211 = vmatpush.msrb.mxu1 %v192_v13 }
  0x2d   :  { %1799 = vmatmul.msk.f32.vlgmr.msrb.gmra.mxu1 %vm162_vm0, %v156_v9 }
  0x2e   :  { %421 = vmatpush.msra.mxu1 %v247_v58 }
  0x2f   :  { %1802 = vmatmul.msk.f32.gmra.mxu2 %vm162_vm0, %v157_v6 }
  0x35   :  { %1800 = vmatmul.msk.f32.gmra.mxu1 %vm162_vm0, %v157_v6 }
  0xa2   :  { %v2257_v14 = vpop.f32.mrf.mxu1  ;;  %v186_v16 = vpop.f32.mrf.mxu0 }
  0xaa   :  { %v2259_v15 = vpop.f32.mrf.mxu1  ;;  %v2270_v17 = vpop.f32.mrf.mxu2 }
  0xab   :  { %451 = vrot.lane.b32.xlu2 %v2259_v15, %s2116_s1  ;;  %326 = vrot.lane.b32.xlu1 %v2259_v15, %s2117_s16 }
  0xac   :  { %1803 = vmatpush.xpose.msk.msra.mxu3 %vm250_vm1, %v2259_v15 }
  0xaf   :  { %1804 = vmatmul.msk.f32.vlgmr.msra.gmra.mxu3 %vm250_vm1, %v186_v16 }
  0xb0   :  { %319 = vmatpush.msrb.mxu3 %v2270_v17 }
  0xb2   :  { %v2292_v0 = vpop.f32.mrf.mxu2 }
  0xb3   :  { %449 = vrot.lane.b32.xlu2 %v186_v16, %s2116_s1  ;;  %324 = vrot.lane.b32.xlu1 %v186_v16, %s2117_s16 }
 0x105   :  { %v452_v38 = vpop.permute.xlu2 %451 }
 0x10d   :  { %v450_v40 = vpop.permute.xlu2 %449 }
 0x11d   :  { %v327_v18 = vpop.permute.xlu1 %326 }
 0x11e   :  { %1806 = vmatpush.xpose.msk.msra.mxu3 %vm250_vm1, %v327_v18 }
 0x125   :  { %v325_v39 = vpop.permute.xlu1 %324 }
 0x132   :  { %v274_v19 = vpop.f32.mrf.mxu3 }
 0x133   :  { %v277_v20 = vsel %vm250_vm1, %v274_v19, -inf }
 0x134   :  { %278 = vmax.xlane.f32.xlu0 %v277_v20 }
 0x1a7   :  { %v279_v21 = vpop.xlane.xlu0 %278 }
 0x1a8   :  { %v280_v22 = vsub.f32 %v274_v19, %v279_v21 }
 0x1aa   :  { %v281_v23 = vmul.f32 1.442695, %v280_v22 }
 0x1ac   :  { %1871 = vpow2.f32 %v281_v23 }
 0x1b2   :  { %v1872_v24 = vpop.eup %1871 }
 0x1b3   :  { %v283_v25 = vsel %vm250_vm1, %v1872_v24, 0.0 }
 0x1b4   :  { %284 = vadd.xlane.f32.xlu0 %v283_v25  ;;  %v248_v25 = vld [vmem:[#allocation8 + $0x10] sm:$0xff] }
 0x1b5   :  { %545 = vmatpush.msrb.mxu1 %v248_v25 }
 0x227   :  { %v285_v26 = vpop.xlane.xlu0 %284 }
 0x228   :  { %1873 = vrcp.f32 %v285_v26  ;;  %v297_v30 = vand.u32 2147483648, %v285_v26  ;;  %v295_v32 = vand.u32 2147483647, %v285_v26  ;;  %vm291_vm3 = vweird.f32 %v285_v26 }
 0x22a   :  { %v298_v34 = vor.u32 1.1754944e-38, %v297_v30  ;;  %vm296_vm5 = vcmp.eq.f32.partialorder %v295_v32, 8.507059e+37 }
 0x22e   :  { %v1874_v27 = vpop.eup %1873 }
 0x22f   :  { %v287_v28 = vmul.f32 %v1874_v27, %v285_v26  ;;  %vm292_vm2 = vweird.f32 %v1874_v27 }
 0x230   :  { %vm293_vm4 = vmor %vm291_vm3, %vm292_vm2 }
 0x231   :  { %v288_v29 = vsub.f32 1.0, %v287_v28 }
 0x233   :  { %v289_v31 = vmul.f32 %v1874_v27, %v288_v29  ;;  %v216_v29 = vpop.f32.mrf.mxu1 }
 0x235   :  { %v290_v33 = vadd.f32 %v1874_v27, %v289_v31 }
 0x237   :  { %v294_v35 = vsel %vm293_vm4, %v1874_v27, %v290_v33 }
 0x238   :  { %v299_v36 = vsel %vm296_vm5, %v298_v34, %v294_v35 }
 0x239   :  { %v300_v37 = vmul.f32 %v1872_v24, %v299_v36 }
 0x23b   :  { %1805 = vmatmul.msk.f32.vlgmr.msrb.gmra.mxu3 %vm250_vm1, %v300_v37 }
 0x23c   :  { %1811 = vmatpush.xpose.msk.msrb.mxu3 %vm250_vm1, %v452_v38 }
 0x243   :  { %1807 = vmatmul.msk.f32.vlgmr.msra.gmra.mxu3 %vm250_vm1, %v325_v39 }
 0x24b   :  { %1812 = vmatmul.msk.f32.vlgmr.msrb.gmra.mxu3 %vm250_vm1, %v450_v40 }
 0x2be   :  { %v321_v42 = vpop.f32.mrf.mxu3 }
 0x2bf   :  { %1810 = vmatmul.msk.f32.vlgmr.msrb.gmra.mxu2 %vm250_vm1, %v321_v42 }
 0x2c6   :  { %v349_v43 = vpop.f32.mrf.mxu3 }
 0x2c7   :  { %v352_v44 = vsel %vm250_vm1, %v349_v43, -inf }
 0x2c8   :  { %353 = vmax.xlane.f32.xlu0 %v352_v44 }
 0x2ce   :  { %v474_v45 = vpop.f32.mrf.mxu3 }
 0x2cf   :  { %v477_v46 = vsel %vm250_vm1, %v474_v45, -inf }
 0x2d0   :  { %478 = vmax.xlane.f32.xlu1 %v477_v46 }
 0x2dc   :  { %377 = vrot.lane.b32.xlu0 %v2270_v17, %s2117_s16 }
 0x2e9   :  { %551 = vrot.lane.b32.xlu1 %v186_v16, %s2118_s17 }
 0x33b   :  { %v354_v47 = vpop.xlane.xlu0 %353 }
 0x33c   :  { %v355_v48 = vsub.f32 %v349_v43, %v354_v47 }
 0x33e   :  { %v356_v49 = vmul.f32 1.442695, %v355_v48 }
 0x340   :  { %1875 = vpow2.f32 %v356_v49 }
 0x342   :  { %v446_v26 = vpop.f32.mrf.mxu2 }
 0x343   :  { %v479_v50 = vpop.xlane.xlu1 %478 }
 0x344   :  { %v480_v51 = vsub.f32 %v474_v45, %v479_v50 }
 0x346   :  { %v1876_v52 = vpop.eup %1875  ;;  %v481_v53 = vmul.f32 1.442695, %v480_v51 }
 0x347   :  { %v358_v54 = vsel %vm250_vm1, %v1876_v52, 0.0 }
 0x348   :  { %1877 = vpow2.f32 %v481_v53  ;;  %359 = vadd.xlane.f32.xlu2 %v358_v54 }
 0x34e   :  { %v1878_v55 = vpop.eup %1877  ;;  %v378_v56 = vpop.permute.xlu0 %377 }
 0x34f   :  { %398 = vmatpush.msrb.mxu0 %v378_v56  ;;  %v483_v57 = vsel %vm250_vm1, %v1878_v55, 0.0 }
 0x350   :  { %484 = vadd.xlane.f32.xlu0 %v483_v57 }
 0x35b   :  { %v552_v2 = vpop.permute.xlu1 %551 }
 0x360   :  { %553 = vrot.lane.b32.xlu2 %v2259_v15, %s2118_s17 }
 0x364   :  { %501 = vrot.lane.b32.xlu0 %v2270_v17, %s2116_s1 }
 0x3bb   :  { %v360_v59 = vpop.xlane.xlu2 %359 }
 0x3bc   :  { %1879 = vrcp.f32 %v360_v59  ;;  %v372_v3 = vand.u32 2147483648, %v360_v59  ;;  %v370_v5 = vand.u32 2147483647, %v360_v59  ;;  %vm366_vm7 = vweird.f32 %v360_v59 }
 0x3be   :  { %v373_v8 = vor.u32 1.1754944e-38, %v372_v3  ;;  %vm371_vm9 = vcmp.eq.f32.partialorder %v370_v5, 8.507059e+37 }
 0x3c2   :  { %v1880_v60 = vpop.eup %1879 }
 0x3c3   :  { %v362_v61 = vmul.f32 %v1880_v60, %v360_v59  ;;  %v554_v62 = vpop.permute.xlu2 %553  ;;  %v485_v63 = vpop.xlane.xlu0 %484  ;;  %vm367_vm6 = vweird.f32 %v1880_v60 }
 0x3c4   :  { %1881 = vrcp.f32 %v485_v63  ;;  %1815 = vmatpush.xpose.msk.msra.mxu2 %vm250_vm1, %v554_v62  ;;  %vm368_vm8 = vmor %vm366_vm7, %vm367_vm6  ;;  %v497_v15 = vand.u32 2147483648, %v485_v63  ;;  %v495_v18 = vand.u32 2147483647, %v485_v63  ;;  %vm491_vm11 = vweird.f32 %v485_v63 }
 0x3c5   :  { %v363_v1 = vsub.f32 1.0, %v362_v61 }
 0x3c6   :  { %v498_v20 = vor.u32 1.1754944e-38, %v497_v15  ;;  %vm496_vm13 = vcmp.eq.f32.partialorder %v495_v18, 8.507059e+37 }
 0x3c7   :  { %v364_v4 = vmul.f32 %v1880_v60, %v363_v1  ;;  %1816 = vmatmul.msk.f32.vlgmr.msra.gmra.mxu2 %vm250_vm1, %v552_v2 }
 0x3c8   :  { %721 = vmatpush.msrb.mxu2 %v2292_v0 }
 0x3c9   :  { %v365_v6 = vadd.f32 %v1880_v60, %v364_v4 }
 0x3ca   :  { %846 = vmatpush.msra.mxu2 %v246_v41  ;;  %v1882_v7 = vpop.eup %1881 }
 0x3cb   :  { %v487_v9 = vmul.f32 %v1882_v7, %v485_v63  ;;  %v369_v10 = vsel %vm368_vm8, %v1880_v60, %v365_v6  ;;  %vm492_vm10 = vweird.f32 %v1882_v7  ;;  %v2322_v63 = vld [vmem:[#allocation8 + $0x18] sm:$0xff] }
 0x3cc   :  { %v374_v11 = vsel %vm371_vm9, %v373_v8, %v369_v10  ;;  %vm493_vm12 = vmor %vm491_vm11, %vm492_vm10 }
 0x3cd   :  { %v488_v12 = vsub.f32 1.0, %v487_v9  ;;  %v375_v13 = vmul.f32 %v1876_v52, %v374_v11 }
 0x3cf   :  { %v489_v16 = vmul.f32 %v1882_v7, %v488_v12  ;;  %1808 = vmatmul.msk.f32.vlgmr.msrb.gmra.mxu0 %vm250_vm1, %v375_v13 }
 0x3d1   :  { %v490_v19 = vadd.f32 %v1882_v7, %v489_v16 }
 0x3d3   :  { %v494_v21 = vsel %vm493_vm12, %v1882_v7, %v490_v19 }
 0x3d4   :  { %v499_v22 = vsel %vm496_vm13, %v498_v20, %v494_v21 }
 0x3d5   :  { %v500_v23 = vmul.f32 %v1878_v55, %v499_v22 }
 0x3d6   :  { %v502_v24 = vpop.permute.xlu0 %501 }
 0x3d7   :  { %522 = vmatpush.msra.mxu0 %v502_v24 }
 0x3d8   :  { %1813 = vmatmul.msk.f32.vlgmr.msra.gmra.mxu0 %vm250_vm1, %v500_v23 }
 0x3d9   :  { %647 = vmatpush.msrb.mxu0 %v2322_v63 }
 0x44a   :  { %v576_v27 = vpop.f32.mrf.mxu2 }
 0x44b   :  { %v579_v28 = vsel %vm250_vm1, %v576_v27, -inf }
 0x44c   :  { %580 = vmax.xlane.f32.xlu1 %v579_v28  ;;  %v400_v30 = vpop.f32.mrf.mxu0 }
 0x44d   :  { %1809 = vmatmul.msk.f32.vlgmr.msra.gmra.mxu1 %vm250_vm1, %v400_v30 }
 0x44e   :  { %1819 = vmatpush.xpose.msk.msra.mxu1 %vm250_vm1, %v216_v29 }
 0x455   :  { %v524_v31 = vpop.f32.mrf.mxu0 }
 0x456   :  { %1814 = vmatmul.msk.f32.vlgmr.msrb.gmra.mxu1 %vm250_vm1, %v524_v31 }
 0x457   :  { %823 = vmatpush.msrb.mxu1 %v247_v58 }
 0x45e   :  { %1820 = vmatmul.msk.f32.vlgmr.msra.gmra.mxu1 %vm250_vm1, %v2257_v14 }
 0x45f   :  { %947 = vmatpush.msra.mxu1 %v248_v25 }
 0x465   :  { %726 = vrot.lane.b32.xlu1 %v2257_v14, %s2117_s16 }
 0x4bf   :  { %v581_v33 = vpop.xlane.xlu1 %580 }
 0x4c0   :  { %v582_v35 = vsub.f32 %v576_v27, %v581_v33 }
 0x4c2   :  { %v583_v38 = vmul.f32 1.442695, %v582_v35 }
 0x4c4   :  { %1883 = vpow2.f32 %v583_v38 }
 0x4ca   :  { %v423_v32 = vpop.f32.mrf.mxu1  ;;  %v1884_v41 = vpop.eup %1883 }
 0x4cb   :  { %v447_v34 = vadd.f32 %v446_v26, %v423_v32  ;;  %v585_v42 = vsel %vm250_vm1, %v1884_v41, 0.0 }
 0x4d3   :  { %v547_v36 = vpop.f32.mrf.mxu1 }
 0x4d4   :  { %v2307_v37 = vadd.f32 %v547_v36, %v447_v34 }
 0x4d7   :  { %v727_v6 = vpop.permute.xlu1 %726 }
 0x4db   :  { %v676_v39 = vpop.f32.mrf.mxu1 }
 0x4dc   :  { %v679_v40 = vsel %vm250_vm1, %v676_v39, -inf }
 0x4dd   :  { %680 = vmax.xlane.f32.xlu0 %v679_v40 }
 0x4e5   :  { %586 = vadd.xlane.f32.xlu0 %v585_v42 }
 0x4f9   :  { %603 = vrot.lane.b32.xlu0 %v2270_v17, %s2118_s17 }
 0x501   :  { %955 = vrot.lane.b32.xlu0 %v216_v29, %s2118_s17 }
 0x509   :  { %953 = vrot.lane.b32.xlu0 %v2257_v14, %s2118_s17 }
 0x511   :  { %853 = vrot.lane.b32.xlu0 %v216_v29, %s2116_s1 }
 0x550   :  { %v681_v43 = vpop.xlane.xlu0 %680 }
 0x551   :  { %v682_v44 = vsub.f32 %v676_v39, %v681_v43 }
 0x553   :  { %v683_v45 = vmul.f32 1.442695, %v682_v44 }
 0x555   :  { %1885 = vpow2.f32 %v683_v45 }
 0x558   :  { %v587_v46 = vpop.xlane.xlu0 %586 }
 0x559   :  { %1887 = vrcp.f32 %v587_v46  ;;  %v599_v51 = vand.u32 2147483648, %v587_v46  ;;  %v597_v53 = vand.u32 2147483647, %v587_v46  ;;  %vm593_vm15 = vweird.f32 %v587_v46 }
 0x55b   :  { %v1886_v47 = vpop.eup %1885  ;;  %v600_v55 = vor.u32 1.1754944e-38, %v599_v51  ;;  %vm598_vm3 = vcmp.eq.f32.partialorder %v597_v53, 8.507059e+37 }
 0x55c   :  { %v685_v48 = vsel %vm250_vm1, %v1886_v47, 0.0 }
 0x55d   :  { %686 = vadd.xlane.f32.xlu2 %v685_v48 }
 0x55f   :  { %v1888_v49 = vpop.eup %1887 }
 0x560   :  { %v589_v50 = vmul.f32 %v1888_v49, %v587_v46  ;;  %vm594_vm14 = vweird.f32 %v1888_v49 }
 0x561   :  { %vm595_vm2 = vmor %vm593_vm15, %vm594_vm14 }
 0x562   :  { %v590_v17 = vsub.f32 1.0, %v589_v50 }
 0x564   :  { %v591_v52 = vmul.f32 %v1888_v49, %v590_v17 }
 0x566   :  { %v592_v54 = vadd.f32 %v1888_v49, %v591_v52 }
 0x568   :  { %v596_v56 = vsel %vm595_vm2, %v1888_v49, %v592_v54 }
 0x569   :  { %v601_v57 = vsel %vm598_vm3, %v600_v55, %v596_v56 }
 0x56a   :  { %v602_v58 = vmul.f32 %v1884_v41, %v601_v57 }
 0x56b   :  { %v604_v59 = vpop.permute.xlu0 %603 }
 0x56c   :  { %624 = vmatpush.msra.mxu3 %v604_v59 }
 0x56d   :  { %1817 = vmatmul.msk.f32.vlgmr.msra.gmra.mxu3 %vm250_vm1, %v602_v58 }
 0x573   :  { %v956_v60 = vpop.permute.xlu0 %955 }
 0x575   :  { %728 = vrot.lane.b32.xlu2 %v216_v29, %s2117_s16 }
 0x57b   :  { %v954_v61 = vpop.permute.xlu0 %953 }
 0x57d   :  { %851 = vrot.lane.b32.xlu2 %v2257_v14, %s2116_s1 }
 0x583   :  { %v854_v4 = vpop.permute.xlu0 %853 }
 0x5d0   :  { %v687_v62 = vpop.xlane.xlu2 %686 }
 0x5d1   :  { %1889 = vrcp.f32 %v687_v62  ;;  %v699_v7 = vand.u32 2147483648, %v687_v62  ;;  %v697_v8 = vand.u32 2147483647, %v687_v62  ;;  %vm693_vm5 = vweird.f32 %v687_v62 }
 0x5d3   :  { %v700_v10 = vor.u32 1.1754944e-38, %v699_v7  ;;  %vm698_vm7 = vcmp.eq.f32.partialorder %v697_v8, 8.507059e+37  ;;  %v1064_v7 = vld [vmem:[#allocation10 + $0x18] sm:$0xff]  ;;  %v1063_v8 = vld [vmem:[#allocation10 + $0x10] sm:$0xff] }
 0x5d7   :  { %v1890_v1 = vpop.eup %1889 }
 0x5d8   :  { %v689_v2 = vmul.f32 %v1890_v1, %v687_v62  ;;  %v729_v3 = vpop.permute.xlu2 %728  ;;  %vm694_vm4 = vweird.f32 %v1890_v1 }
 0x5d9   :  { %1822 = vmatpush.xpose.msk.msrb.mxu3 %vm250_vm1, %v729_v3  ;;  %vm695_vm6 = vmor %vm693_vm5, %vm694_vm4 }
 0x5da   :  { %v690_v5 = vsub.f32 1.0, %v689_v2 }
 0x5dc   :  { %v691_v14 = vmul.f32 %v1890_v1, %v690_v5  ;;  %1823 = vmatmul.msk.f32.vlgmr.msrb.gmra.mxu3 %vm250_vm1, %v727_v6 }
 0x5dd   :  { %1827 = vmatpush.xpose.msk.msra.mxu3 %vm250_vm1, %v854_v4 }
 0x5de   :  { %v692_v9 = vadd.f32 %v1890_v1, %v691_v14 }
 0x5e0   :  { %v696_v11 = vsel %vm695_vm6, %v1890_v1, %v692_v9  ;;  %v852_v15 = vpop.permute.xlu2 %851  ;;  %v1062_v9 = vld [vmem:[#allocation10 + $0x8] sm:$0xff]  ;;  %vm1213_vm6 = vcmask 253952  }
 0x5e1   :  { %v701_v12 = vsel %vm698_vm7, %v700_v10, %v696_v11 }
 0x5e2   :  { %v702_v13 = vmul.f32 %v1886_v47, %v701_v12 }
 0x5e4   :  { %1821 = vmatmul.msk.f32.vlgmr.msrb.gmra.mxu2 %vm250_vm1, %v702_v13  ;;  %1828 = vmatmul.msk.f32.vlgmr.msra.gmra.mxu3 %vm250_vm1, %v852_v15  ;;  %v1061_v13 = vld [vmem:[#allocation10] sm:$0xff] }
 0x5e5   :  { %1831 = vmatpush.xpose.msk.msrb.mxu2 %vm250_vm1, %v956_v60 }
 0x5f0   :  { %v626_v16 = vpop.f32.mrf.mxu3 }
 0x5f1   :  { %1818 = vmatmul.msk.f32.vlgmr.msrb.gmra.mxu0 %vm250_vm1, %v626_v16 }
 0x65f   :  { %v751_v18 = vpop.f32.mrf.mxu3 }
 0x660   :  { %v754_v19 = vsel %vm250_vm1, %v751_v18, -inf }
 0x661   :  { %755 = vmax.xlane.f32.xlu1 %v754_v19 }
 0x667   :  { %v723_v20 = vpop.f32.mrf.mxu2  ;;  %v876_v21 = vpop.f32.mrf.mxu3 }
 0x668   :  { %1826 = vmatmul.msk.f32.vlgmr.msra.gmra.mxu2 %vm250_vm1, %v723_v20  ;;  %v879_v22 = vsel %vm250_vm1, %v876_v21, -inf }
 0x669   :  { %880 = vmax.xlane.f32.xlu2 %v879_v22 }
 0x66e   :  { %v649_v5 = vpop.f32.mrf.mxu0 }
 0x670   :  { %1832 = vmatmul.msk.f32.vlgmr.msrb.gmra.mxu2 %vm250_vm1, %v954_v61 }
 0x6d4   :  { %v756_v23 = vpop.xlane.xlu1 %755 }
 0x6d5   :  { %v757_v24 = vsub.f32 %v751_v18, %v756_v23 }
 0x6d7   :  { %v758_v25 = vmul.f32 1.442695, %v757_v24  ;;  %v652_v24 = vadd.f32 %v649_v5, %v2307_v37  ;;  %v1098_v37 = vld [vmem:[#allocation11] sm:$0xff] }
 0x6d9   :  { %1891 = vpow2.f32 %v758_v25  ;;  %v1866_v25 = vld [vmem:[%s2545_s5] ss:$0 sm:$0xff] }
 0x6dc   :  { %v881_v28 = vpop.xlane.xlu2 %880 }
 0x6dd   :  { %v882_v29 = vsub.f32 %v876_v21, %v881_v28  ;;  %v1100_v28 = vld [vmem:[#allocation11 + $0x10] sm:$0xff] }
 0x6df   :  { %v1892_v26 = vpop.eup %1891  ;;  %v883_v31 = vmul.f32 1.442695, %v882_v29  ;;  %v1140_v29 = vld [vmem:[#allocation13 + $0x18] sm:$0xff] }
 0x6e0   :  { %v760_v27 = vsel %vm250_vm1, %v1892_v26, 0.0 }
 0x6e1   :  { %761 = vadd.xlane.f32.xlu1 %v760_v27  ;;  %1893 = vpow2.f32 %v883_v31  ;;  %v1101_v27 = vld [vmem:[#allocation11 + $0x18] sm:$0xff]  ;;  %v1099_v31 = vld [vmem:[#allocation11 + $0x8] sm:$0xff] }
 0x6e2   :  { %1124 = vmatpush.msra.mxu2 %v1101_v27 }
 0x6e4   :  { %1125 = vmatpush.msra.mxu2 %v1100_v28 }
 0x6e6   :  { %1126 = vmatpush.msra.mxu2 %v1099_v31 }
 0x6e7   :  { %v1894_v34 = vpop.eup %1893 }
 0x6e8   :  { %v885_v35 = vsel %vm250_vm1, %v1894_v34, 0.0  ;;  %1127 = vmatpush.msra.mxu2 %v1098_v37 }
 0x6ea   :  { %1510 = vmatpush.msrb.mxu2 %v1140_v29 }
 0x6eb   :  { %v2337_v30 = vpop.f32.mrf.mxu2 }
 0x6f3   :  { %v978_v32 = vpop.f32.mrf.mxu2 }
 0x6f4   :  { %v981_v33 = vsel %vm250_vm1, %v978_v32, -inf }
 0x6f5   :  { %982 = vmax.xlane.f32.xlu0 %v981_v33  ;;  %v1138_v33 = vld [vmem:[#allocation13 + $0x8] sm:$0xff] }
 0x6fa   :  { %779 = vrot.lane.b32.xlu1 %v2292_v0, %s2117_s16 }
 0x6fd   :  { %886 = vadd.xlane.f32.xlu0 %v885_v35  ;;  %v2119_v35 = vmov 0.0  }
 0x711   :  { %903 = vrot.lane.b32.xlu0 %v2292_v0, %s2116_s1 }
 0x754   :  { %v762_v36 = vpop.xlane.xlu1 %761 }
 0x755   :  { %1895 = vrcp.f32 %v762_v36  ;;  %v774_v43 = vand.u32 2147483648, %v762_v36  ;;  %vm768_vm9 = vweird.f32 %v762_v36  ;;  %v772_v44 = vand.u32 2147483647, %v762_v36 }
 0x757   :  { %v775_v46 = vor.u32 1.1754944e-38, %v774_v43  ;;  %vm773_vm11 = vcmp.eq.f32.partialorder %v772_v44, 8.507059e+37 }
 0x75b   :  { %v1896_v38 = vpop.eup %1895 }
 0x75c   :  { %v764_v39 = vmul.f32 %v1896_v38, %v762_v36  ;;  %vm769_vm8 = vweird.f32 %v1896_v38 }
 0x75d   :  { %vm770_vm10 = vmor %vm768_vm9, %vm769_vm8 }
 0x75e   :  { %v765_v40 = vsub.f32 1.0, %v764_v39 }
 0x760   :  { %v766_v41 = vmul.f32 %v1896_v38, %v765_v40 }
 0x762   :  { %v767_v42 = vadd.f32 %v1896_v38, %v766_v41 }
 0x764   :  { %v771_v45 = vsel %vm770_vm10, %v1896_v38, %v767_v42  ;;  %v1867_v42 = vld [vmem:[%s2547_s7] ss:$0 sm:$0xff] }
 0x765   :  { %v776_v48 = vsel %vm773_vm11, %v775_v46, %v771_v45 }
 0x766   :  { %v777_v51 = vmul.f32 %v1892_v26, %v776_v48  ;;  %v1059_v26 = vadd.f32 %v1866_v25, %v652_v24 }
 0x768   :  { %v983_v47 = vpop.xlane.xlu0 %982 }
 0x769   :  { %v984_v49 = vsub.f32 %v978_v32, %v983_v47  ;;  %v1139_v32 = vld [vmem:[#allocation13 + $0x10] sm:$0xff] }
 0x76a   :  { %1511 = vmatpush.msrb.mxu2 %v1139_v32 }
 0x76b   :  { %v985_v50 = vmul.f32 1.442695, %v984_v49 }
 0x76c   :  { %v780_v17 = vpop.permute.xlu1 %779  ;;  %1512 = vmatpush.msrb.mxu2 %v1138_v33 }
 0x76d   :  { %1897 = vpow2.f32 %v985_v50  ;;  %800 = vmatpush.msra.mxu0 %v780_v17  ;;  %v1868_v50 = vld [vmem:[%s2550_s10] ss:$0 sm:$0xff] }
 0x76e   :  { %1824 = vmatmul.msk.f32.vlgmr.msra.gmra.mxu0 %vm250_vm1, %v777_v51 }
 0x770   :  { %v887_v52 = vpop.xlane.xlu0 %886 }
 0x771   :  { %1899 = vrcp.f32 %v887_v52  ;;  %v899_v58 = vand.u32 2147483648, %v887_v52  ;;  %v897_v60 = vand.u32 2147483647, %v887_v52  ;;  %vm893_vm13 = vweird.f32 %v887_v52 }
 0x773   :  { %v1898_v53 = vpop.eup %1897  ;;  %v900_v62 = vor.u32 1.1754944e-38, %v899_v58  ;;  %vm898_vm15 = vcmp.eq.f32.partialorder %v897_v60, 8.507059e+37  ;;  %v1135_v60 = vld [vmem:[%s2551_s11] sm:$0x1] }
 0x774   :  { %v987_v54 = vsel %vm250_vm1, %v1898_v53, 0.0 }
 0x775   :  { %988 = vadd.xlane.f32.xlu2 %v987_v54 }
 0x777   :  { %v1900_v55 = vpop.eup %1899 }
 0x778   :  { %v889_v56 = vmul.f32 %v1900_v55, %v887_v52  ;;  %vm894_vm12 = vweird.f32 %v1900_v55 }
 0x779   :  { %vm895_vm14 = vmor %vm893_vm13, %vm894_vm12 }
 0x77a   :  { %v890_v57 = vsub.f32 1.0, %v889_v56  ;;  %v2378_v56 = vld [vmem:[%s2551_s11] ss:$0 sm:$0xff] }
 0x77c   :  { %v891_v59 = vmul.f32 %v1900_v55, %v890_v57 }
 0x77e   :  { %v892_v61 = vadd.f32 %v1900_v55, %v891_v59 }
 0x780   :  { %v896_v1 = vsel %vm895_vm14, %v1900_v55, %v892_v61 }
 0x781   :  { %v901_v2 = vsel %vm898_vm15, %v900_v62, %v896_v1  ;;  %v1136_v62 = vsub.f32 1.0, %v1135_v60 }
 0x782   :  { %v902_v3 = vmul.f32 %v1894_v34, %v901_v2  ;;  %v1137_v34 = vld [vmem:[#allocation13] sm:$0xff] }
 0x783   :  { %v904_v4 = vpop.permute.xlu0 %903  ;;  %1513 = vmatpush.msrb.mxu2 %v1137_v34  ;;  %v2386_v1 = vperm.slane %v1136_v62, 0 }
 0x784   :  { %924 = vmatpush.msrb.mxu0 %v904_v4 }
 0x785   :  { %1829 = vmatmul.msk.f32.vlgmr.msrb.gmra.mxu0 %vm250_vm1, %v902_v3 }
 0x786   :  { %1049 = vmatpush.msra.mxu0 %v2322_v63 }
 0x788   :  { %1232 = vmatpush.msrb.mxu0 %v1140_v29 }
 0x78a   :  { %1233 = vmatpush.msrb.mxu0 %v1139_v32 }
 0x78c   :  { %1234 = vmatpush.msrb.mxu0 %v1138_v33 }
 0x78d   :  { %1005 = vrot.lane.b32.xlu2 %v2292_v0, %s2118_s17 }
 0x78e   :  { %1235 = vmatpush.msrb.mxu0 %v1137_v34 }
 0x7e8   :  { %v989_v6 = vpop.xlane.xlu2 %988 }
 0x7e9   :  { %1901 = vrcp.f32 %v989_v6  ;;  %v1001_v15 = vand.u32 2147483648, %v989_v6  ;;  %v999_v16 = vand.u32 2147483647, %v989_v6  ;;  %vm995_vm3 = vweird.f32 %v989_v6 }
 0x7eb   :  { %v802_v14 = vpop.f32.mrf.mxu0  ;;  %v1002_v19 = vor.u32 1.1754944e-38, %v1001_v15  ;;  %vm1000_vm5 = vcmp.eq.f32.partialorder %v999_v16, 8.507059e+37 }
 0x7ec   :  { %1825 = vmatmul.msk.f32.vlgmr.msrb.gmra.mxu1 %vm250_vm1, %v802_v14 }
 0x7ed   :  { %1087 = vmatpush.msrb.mxu1 %v1064_v7 }
 0x7ef   :  { %v1902_v10 = vpop.eup %1901  ;;  %1088 = vmatpush.msrb.mxu1 %v1063_v8 }
 0x7f0   :  { %v991_v11 = vmul.f32 %v1902_v10, %v989_v6  ;;  %v1006_v12 = vpop.permute.xlu2 %1005  ;;  %vm996_vm2 = vweird.f32 %v1902_v10 }
 0x7f1   :  { %1026 = vmatpush.msrb.mxu3 %v1006_v12  ;;  %1089 = vmatpush.msrb.mxu1 %v1062_v9  ;;  %vm997_vm4 = vmor %vm995_vm3, %vm996_vm2 }
 0x7f2   :  { %v992_v63 = vsub.f32 1.0, %v991_v11 }
 0x7f3   :  { %1090 = vmatpush.msrb.mxu1 %v1061_v13  ;;  %1156 = vmatpush.msra.mxu3 %v1140_v29 }
 0x7f4   :  { %v993_v0 = vmul.f32 %v1902_v10, %v992_v63 }
 0x7f5   :  { %1157 = vmatpush.msra.mxu3 %v1139_v32 }
 0x7f6   :  { %v994_v18 = vadd.f32 %v1902_v10, %v993_v0 }
 0x7f7   :  { %1158 = vmatpush.msra.mxu3 %v1138_v33 }
 0x7f8   :  { %v998_v20 = vsel %vm997_vm4, %v1902_v10, %v994_v18 }
 0x7f9   :  { %v1003_v21 = vsel %vm1000_vm5, %v1002_v19, %v998_v20  ;;  %1159 = vmatpush.msra.mxu3 %v1137_v34 }
 0x7fa   :  { %v1004_v22 = vmul.f32 %v1898_v53, %v1003_v21 }
 0x7fc   :  { %1833 = vmatmul.msk.f32.vlgmr.msrb.gmra.mxu3 %vm250_vm1, %v1004_v22 }
 0x7fd   :  { %1300 = vmatpush.msrb.mxu3 %v1140_v29 }
 0x7ff   :  { %1301 = vmatpush.msrb.mxu3 %v1139_v32 }
 0x801   :  { %1302 = vmatpush.msrb.mxu3 %v1138_v33 }
 0x802   :  { %v926_v23 = vpop.f32.mrf.mxu0 }
 0x803   :  { %1830 = vmatmul.msk.f32.vlgmr.msra.gmra.mxu1 %vm250_vm1, %v926_v23  ;;  %1303 = vmatpush.msrb.mxu3 %v1137_v34 }
 0x804   :  { %1440 = vmatpush.msra.mxu1 %v1140_v29  ;;  %1160 = vmatmul.f32.vlgmr.msra.gmra.mxu3 %v2119_v35 }
 0x805   :  { %1580 = vmatpush.msra.mxu3 %v1140_v29 }
 0x806   :  { %1441 = vmatpush.msra.mxu1 %v1139_v32 }
 0x807   :  { %1581 = vmatpush.msra.mxu3 %v1139_v32 }
 0x808   :  { %1442 = vmatpush.msra.mxu1 %v1138_v33 }
 0x809   :  { %1582 = vmatpush.msra.mxu3 %v1138_v33 }
 0x80a   :  { %1443 = vmatpush.msra.mxu1 %v1137_v34 }
 0x80b   :  { %1835 = vmatmul.msk.f32.vlgmr.msrb.gmra.mxu1 %vm162_vm0, %v1059_v26  ;;  %1583 = vmatpush.msra.mxu3 %v1137_v34 }
 0x869   :  { %v825_v36 = vpop.f32.mrf.mxu1 }
 0x86a   :  { %v849_v38 = vadd.f32 %v2337_v30, %v825_v36 }
 0x87f   :  { %v1028_v39 = vpop.f32.mrf.mxu3 }
 0x880   :  { %v949_v40 = vpop.f32.mrf.mxu1  ;;  %1834 = vmatmul.msk.f32.vlgmr.msra.gmra.mxu0 %vm250_vm1, %v1028_v39  ;;  %vm1176_vm1 = vcmask 1041409  }
 0x881   :  { %v952_v41 = vadd.f32 %v949_v40, %v849_v38  ;;  %1370 = vmatpush.msra.mxu0 %v1140_v29 }
 0x883   :  { %1371 = vmatpush.msra.mxu0 %v1139_v32 }
 0x885   :  { %1372 = vmatpush.msra.mxu0 %v1138_v33 }
 0x887   :  { %1373 = vmatpush.msra.mxu0 %v1137_v34  ;;  %v1161_v17 = vpop.f32.mrf.mxu3 }
 0x888   :  { %v1092_v43 = vpop.f32.mrf.mxu1  ;;  %v1165_v51 = vrot.slane %v1161_v17, 1 }
 0x889   :  { %v1093_v44 = vadd.f32 %v1867_v42, %v1092_v43 }
 0x88b   :  { %1837 = vmatmul.msk.f32.vlgmr.msra.gmra.mxu2 %vm162_vm0, %v1093_v44 }
 0x8fd   :  { %v1051_v45 = vpop.f32.mrf.mxu0 }
 0x8fe   :  { %v1054_v46 = vadd.f32 %v1051_v45, %v952_v41 }
 0x900   :  { %v1060_v30 = vadd.f32 %v1866_v25, %v1054_v46 }
 0x902   :  { %1836 = vmatmul.msk.f32.gmra.mxu1 %vm162_vm0, %v1060_v30 }
 0x90e   :  { %v1129_v49 = vpop.f32.mrf.mxu2 }
 0x90f   :  { %v2370_v53 = vadd.f32 %v1868_v50, %v1129_v49 }
 0x911   :  { %v1168_v57 = vadd.f32 %v1161_v17, %v2370_v53 }
 0x97f   :  { %v1095_v47 = vpop.f32.mrf.mxu1 }
 0x980   :  { %v1096_v48 = vadd.f32 %v1867_v42, %v1095_v47 }
 0x982   :  { %1838 = vmatmul.msk.f32.gmra.mxu2 %vm162_vm0, %v1096_v48 }
 0xa05   :  { %v1132_v52 = vpop.f32.mrf.mxu2 }
 0xa06   :  { %v2372_v54 = vadd.f32 %v1868_v50, %v1132_v52 }
 0xa08   :  { %v1169_v55 = vadd.f32 %v1165_v51, %v2372_v54 }
 0xa0a   :  { %v1175_v58 = vrot.slane %v1169_v55, 7 }
 0xa0c   :  { %v1177_v59 = vsel %vm1176_vm1, %v1175_v58, %v1168_v57 }
 0xa0d   :  { %v1179_v61 = vmul.f32 %v2378_v56, %v1177_v59 }
 0xa0f   :  { %1903 = vtanh.f32 %v1179_v61 }
 0xa15   :  { %v1904_v2 = vpop.eup %1903 }
 0xa16   :  { %v1181_v3 = vmul.f32 %v1904_v2, %v2378_v56 }
 0xa18   :  { %v1185_v4 = vadd.f32 %v2386_v1, %v1181_v3 }
 0xa1a   :  { %1188 = vrot.lane.b32.xlu0 %v1185_v4, %s2120_s3  ;;  %v1186_v7 = vmul.f32 0.0, %v1185_v4 }
 0xa8c   :  { %v1189_v5 = vpop.permute.xlu0 %1188 }
 0xa8d   :  { %v1191_v6 = vmul.f32 %v1189_v5, %v1185_v4 }
 0xa8f   :  { %1193 = vrot.lane.b32.xlu1 %v1191_v6, %s2121_s26 }
 0xb01   :  { %v1194_v14 = vpop.permute.xlu1 %1193 }
 0xb02   :  { %v1196_v8 = vadd.f32 %v1194_v14, %v1186_v7 }
 0xb04   :  { %1905 = vtanh.f32 %v1196_v8 }
 0xb0a   :  { %v1906_v9 = vpop.eup %1905 }
 0xb0b   :  { %1199 = vrot.lane.b32.xlu2 %v1906_v9, %s2120_s3 }
 0xb65   :  { %v1200_v10 = vpop.permute.xlu2 %1199 }
 0xb66   :  { %v2393_v11 = vmul.f32 %v1200_v10, %v1185_v4 }
 0xb68   :  { %1216 = vrot.lane.b32.xlu0 %v2393_v11, %s2121_s26 }
 0xbda   :  { %v1217_v12 = vpop.permute.xlu0 %1216 }
 0xbdb   :  { %1839 = vmatmul.msk.f32.vlgmr.msrb.gmra.mxu0 %vm162_vm0, %v1217_v12 }
 0xc58   :  { %v1237_v13 = vpop.f32.mrf.mxu0 }
 0xc59   :  { %v1241_v63 = vrot.slane %v1237_v13, 7  ;;  %v1245_v0 = vadd.f32 %v1237_v13, %v2372_v54 }
 0xc5b   :  { %v1244_v15 = vadd.f32 %v1241_v63, %v2370_v53 }
 0xc5d   :  { %v1248_v16 = vrot.slane %v1244_v15, 1 }
 0xc5f   :  { %v1249_v18 = vsel %vm1176_vm1, %v1245_v0, %v1248_v16 }
 0xc60   :  { %v1251_v19 = vmul.f32 %v2378_v56, %v1249_v18 }
 0xc62   :  { %1907 = vtanh.f32 %v1251_v19 }
 0xc68   :  { %v1908_v20 = vpop.eup %1907 }
 0xc69   :  { %v1253_v21 = vmul.f32 %v1908_v20, %v2378_v56 }
 0xc6b   :  { %v1254_v22 = vadd.f32 %v1253_v21, %v2386_v1 }
 0xc6d   :  { %1257 = vrot.lane.b32.xlu1 %v1254_v22, %s2120_s3  ;;  %v1255_v25 = vmul.f32 %v1254_v22, %v1196_v8 }
 0xcdf   :  { %v1258_v23 = vpop.permute.xlu1 %1257 }
 0xce0   :  { %v1260_v24 = vmul.f32 %v1258_v23, %v1254_v22 }
 0xce2   :  { %1262 = vrot.lane.b32.xlu2 %v1260_v24, %s2121_s26 }
 0xd3c   :  { %v1263_v26 = vpop.permute.xlu2 %1262 }
 0xd3d   :  { %v1265_v27 = vadd.f32 %v1263_v26, %v1255_v25 }
 0xd3f   :  { %1909 = vtanh.f32 %v1265_v27 }
 0xd45   :  { %v1910_v28 = vpop.eup %1909 }
 0xd46   :  { %1268 = vrot.lane.b32.xlu0 %v1910_v28, %s2120_s3 }
 0xdb8   :  { %v1269_v29 = vpop.permute.xlu0 %1268 }
 0xdb9   :  { %v2407_v31 = vmul.f32 %v1269_v29, %v1254_v22 }
 0xdbb   :  { %1284 = vrot.lane.b32.xlu1 %v2407_v31, %s2121_s26 }
 0xe2d   :  { %v1285_v32 = vpop.permute.xlu1 %1284 }
 0xe2e   :  { %1840 = vmatmul.msk.f32.vlgmr.msrb.gmra.mxu3 %vm162_vm0, %v1285_v32 }
 0xeb1   :  { %v1305_v37 = vpop.f32.mrf.mxu3 }
 0xeb2   :  { %v1309_v33 = vrot.slane %v1305_v37, 6  ;;  %v1310_v34 = vrot.slane %v1305_v37, 7 }
 0xeb4   :  { %v1313_v35 = vadd.f32 %v1309_v33, %v2370_v53  ;;  %v1314_v36 = vadd.f32 %v1310_v34, %v2372_v54 }
 0xeb6   :  { %v1317_v38 = vrot.slane %v1313_v35, 2  ;;  %v1318_v39 = vrot.slane %v1314_v36, 1 }
 0xeb8   :  { %v1319_v40 = vsel %vm1176_vm1, %v1318_v39, %v1317_v38 }
 0xeb9   :  { %v1321_v41 = vmul.f32 %v2378_v56, %v1319_v40 }
 0xebb   :  { %1911 = vtanh.f32 %v1321_v41 }
 0xec1   :  { %v1912_v42 = vpop.eup %1911 }
 0xec2   :  { %v1323_v43 = vmul.f32 %v1912_v42, %v2378_v56 }
 0xec4   :  { %v1324_v44 = vadd.f32 %v1323_v43, %v2386_v1 }
 0xec6   :  { %1327 = vrot.lane.b32.xlu2 %v1324_v44, %s2120_s3  ;;  %v1325_v30 = vmul.f32 %v1324_v44, %v1265_v27 }
 0xf20   :  { %v1328_v45 = vpop.permute.xlu2 %1327 }
 0xf21   :  { %v1330_v46 = vmul.f32 %v1328_v45, %v1324_v44 }
 0xf23   :  { %1332 = vrot.lane.b32.xlu0 %v1330_v46, %s2121_s26 }
 0xf95   :  { %v1333_v47 = vpop.permute.xlu0 %1332 }
 0xf96   :  { %v1335_v48 = vadd.f32 %v1333_v47, %v1325_v30 }
 0xf98   :  { %1913 = vtanh.f32 %v1335_v48 }
 0xf9e   :  { %v1914_v49 = vpop.eup %1913 }
 0xf9f   :  { %1338 = vrot.lane.b32.xlu1 %v1914_v49, %s2120_s3 }
0x1011   :  { %v1339_v50 = vpop.permute.xlu1 %1338 }
0x1012   :  { %v2421_v17 = vmul.f32 %v1339_v50, %v1324_v44 }
0x1014   :  { %1354 = vrot.lane.b32.xlu2 %v2421_v17, %s2121_s26 }
0x106e   :  { %v1355_v51 = vpop.permute.xlu2 %1354 }
0x106f   :  { %1841 = vmatmul.msk.f32.vlgmr.msra.gmra.mxu0 %vm162_vm0, %v1355_v51 }
0x10ec   :  { %v1375_v52 = vpop.f32.mrf.mxu0 }
0x10ed   :  { %v1379_v55 = vrot.slane %v1375_v52, 5  ;;  %v1380_v57 = vrot.slane %v1375_v52, 6 }
0x10ef   :  { %v1383_v58 = vadd.f32 %v1379_v55, %v2370_v53  ;;  %v1384_v59 = vadd.f32 %v1380_v57, %v2372_v54 }
0x10f1   :  { %v1387_v60 = vrot.slane %v1383_v58, 3  ;;  %v1388_v61 = vrot.slane %v1384_v59, 2 }
0x10f3   :  { %v1389_v62 = vsel %vm1176_vm1, %v1388_v61, %v1387_v60 }
0x10f4   :  { %v1391_v2 = vmul.f32 %v2378_v56, %v1389_v62 }
0x10f6   :  { %1915 = vtanh.f32 %v1391_v2 }
0x10fc   :  { %v1916_v3 = vpop.eup %1915 }
0x10fd   :  { %v1393_v4 = vmul.f32 %v1916_v3, %v2378_v56 }
0x10ff   :  { %v1394_v5 = vadd.f32 %v1393_v4, %v2386_v1 }
0x1101   :  { %1397 = vrot.lane.b32.xlu0 %v1394_v5, %s2120_s3  ;;  %v1395_v14 = vmul.f32 %v1394_v5, %v1335_v48 }
0x1173   :  { %v1398_v6 = vpop.permute.xlu0 %1397 }
0x1174   :  { %v1400_v7 = vmul.f32 %v1398_v6, %v1394_v5 }
0x1176   :  { %1402 = vrot.lane.b32.xlu1 %v1400_v7, %s2121_s26 }
0x11e8   :  { %v1403_v8 = vpop.permute.xlu1 %1402 }
0x11e9   :  { %v1405_v9 = vadd.f32 %v1403_v8, %v1395_v14 }
0x11eb   :  { %1917 = vtanh.f32 %v1405_v9 }
0x11f1   :  { %v1918_v10 = vpop.eup %1917 }
0x11f2   :  { %1408 = vrot.lane.b32.xlu2 %v1918_v10, %s2120_s3 }
0x124c   :  { %v1409_v12 = vpop.permute.xlu2 %1408 }
0x124d   :  { %v2435_v13 = vmul.f32 %v1409_v12, %v1394_v5  ;;  %v1205_v12 = vperm.slane %v2393_v11, 0 }
0x124f   :  { %1424 = vrot.lane.b32.xlu0 %v2435_v13, %s2121_s26 }
0x12c1   :  { %v1425_v63 = vpop.permute.xlu0 %1424 }
0x12c2   :  { %1842 = vmatmul.msk.f32.vlgmr.msra.gmra.mxu1 %vm162_vm0, %v1425_v63 }
0x133f   :  { %v1445_v15 = vpop.f32.mrf.mxu1 }
0x1340   :  { %v1449_v0 = vrot.slane %v1445_v15, 4  ;;  %v1450_v16 = vrot.slane %v1445_v15, 5 }
0x1342   :  { %v1453_v18 = vadd.f32 %v1449_v0, %v2370_v53  ;;  %v1454_v19 = vadd.f32 %v1450_v16, %v2372_v54 }
0x1344   :  { %v1457_v20 = vrot.slane %v1453_v18, 4  ;;  %v1458_v21 = vrot.slane %v1454_v19, 3  ;;  %v1204_v19 = vrot.slane %v2393_v11, 1 }
0x1346   :  { %v1459_v22 = vsel %vm1176_vm1, %v1458_v21, %v1457_v20  ;;  %v1206_v21 = vperm.slane %v1204_v19, 0 }
0x1347   :  { %v1461_v23 = vmul.f32 %v2378_v56, %v1459_v22  ;;  %v1413_v22 = vrot.slane %v2435_v13, 1 }
0x1349   :  { %1919 = vtanh.f32 %v1461_v23  ;;  %v1415_v23 = vperm.slane %v1413_v22, 0  ;;  %v1870_v22 = vld [vmem:[%s2553_s13] ss:$0 sm:$0xff] }
0x134f   :  { %v1920_v24 = vpop.eup %1919 }
0x1350   :  { %v1463_v25 = vmul.f32 %v1920_v24, %v2378_v56 }
0x1352   :  { %v1464_v26 = vadd.f32 %v1463_v25, %v2386_v1 }
0x1354   :  { %1467 = vrot.lane.b32.xlu1 %v1464_v26, %s2120_s3  ;;  %v1465_v29 = vmul.f32 %v1464_v26, %v1405_v9 }
0x13c6   :  { %v1468_v27 = vpop.permute.xlu1 %1467 }
0x13c7   :  { %v1470_v28 = vmul.f32 %v1468_v27, %v1464_v26 }
0x13c9   :  { %1472 = vrot.lane.b32.xlu2 %v1470_v28, %s2121_s26 }
0x1423   :  { %v1473_v32 = vpop.permute.xlu2 %1472 }
0x1424   :  { %v1475_v37 = vadd.f32 %v1473_v32, %v1465_v29  ;;  %v1344_v29 = vperm.slane %v2421_v17, 0 }
0x1426   :  { %1921 = vtanh.f32 %v1475_v37 }
0x142c   :  { %v1922_v33 = vpop.eup %1921 }
0x142d   :  { %1478 = vrot.lane.b32.xlu0 %v1922_v33, %s2120_s3 }
0x149f   :  { %v1479_v34 = vpop.permute.xlu0 %1478 }
0x14a0   :  { %v2449_v35 = vmul.f32 %v1479_v34, %v1464_v26 }
0x14a2   :  { %1494 = vrot.lane.b32.xlu1 %v2449_v35, %s2121_s26  ;;  %v1484_v18 = vperm.slane %v2449_v35, 0 }
0x1514   :  { %v1495_v36 = vpop.permute.xlu1 %1494 }
0x1515   :  { %1843 = vmatmul.msk.f32.vlgmr.msrb.gmra.mxu2 %vm162_vm0, %v1495_v36 }
0x1598   :  { %v1515_v38 = vpop.f32.mrf.mxu2 }
0x1599   :  { %v1519_v39 = vrot.slane %v1515_v38, 3  ;;  %v1520_v40 = vrot.slane %v1515_v38, 4 }
0x159b   :  { %v1523_v41 = vadd.f32 %v1519_v39, %v2370_v53  ;;  %v1524_v42 = vadd.f32 %v1520_v40, %v2372_v54 }
0x159d   :  { %v1527_v43 = vrot.slane %v1523_v41, 5  ;;  %v1528_v44 = vrot.slane %v1524_v42, 4 }
0x159f   :  { %v1529_v45 = vsel %vm1176_vm1, %v1528_v44, %v1527_v43 }
0x15a0   :  { %v1531_v46 = vmul.f32 %v2378_v56, %v1529_v45 }
0x15a2   :  { %1923 = vtanh.f32 %v1531_v46 }
0x15a8   :  { %v1924_v30 = vpop.eup %1923 }
0x15a9   :  { %v1533_v47 = vmul.f32 %v1924_v30, %v2378_v56  ;;  %v1679_v30 = vld [vmem:[%s2552_s12 + $0x18] sm:$0xff] }
0x15aa   :  { %1737 = vmatpush.msrb.mxu0 %v1679_v30 }
0x15ab   :  { %v1534_v48 = vadd.f32 %v1533_v47, %v2386_v1  ;;  %v1678_v47 = vld [vmem:[%s2552_s12 + $0x10] sm:$0xff] }
0x15ac   :  { %1738 = vmatpush.msrb.mxu0 %v1678_v47 }
0x15ad   :  { %1537 = vrot.lane.b32.xlu2 %v1534_v48, %s2120_s3  ;;  %v1535_v51 = vmul.f32 %v1534_v48, %v1475_v37  ;;  %v1273_v37 = vrot.slane %v2407_v31, 1 }
0x15af   :  { %v1275_v34 = vperm.slane %v1273_v37, 0 }
0x1607   :  { %v1538_v49 = vpop.permute.xlu2 %1537 }
0x1608   :  { %v1540_v50 = vmul.f32 %v1538_v49, %v1534_v48  ;;  %v1676_v49 = vld [vmem:[%s2552_s12] sm:$0xff] }
0x160a   :  { %1542 = vrot.lane.b32.xlu0 %v1540_v50, %s2121_s26 }
0x167c   :  { %v1543_v52 = vpop.permute.xlu0 %1542 }
0x167d   :  { %v1545_v55 = vadd.f32 %v1543_v52, %v1535_v51 }
0x167f   :  { %1925 = vtanh.f32 %v1545_v55 }
0x1685   :  { %v1926_v57 = vpop.eup %1925 }
0x1686   :  { %1548 = vrot.lane.b32.xlu1 %v1926_v57, %s2120_s3 }
0x16f8   :  { %v1549_v58 = vpop.permute.xlu1 %1548 }
0x16f9   :  { %v2463_v59 = vmul.f32 %v1549_v58, %v1534_v48  ;;  %v1677_v48 = vld [vmem:[%s2552_s12 + $0x8] sm:$0xff] }
0x16fa   :  { %1739 = vmatpush.msrb.mxu0 %v1677_v48 }
0x16fb   :  { %1564 = vrot.lane.b32.xlu2 %v2463_v59, %s2121_s26  ;;  %v1554_v32 = vperm.slane %v2463_v59, 0 }
0x16fc   :  { %1740 = vmatpush.msrb.mxu0 %v1676_v49 }
0x1755   :  { %v1565_v60 = vpop.permute.xlu2 %1564 }
0x1756   :  { %1844 = vmatmul.msk.f32.vlgmr.msra.gmra.mxu3 %vm162_vm0, %v1565_v60 }
0x17d9   :  { %v1585_v61 = vpop.f32.mrf.mxu3 }
0x17da   :  { %v1589_v62 = vrot.slane %v1585_v61, 2  ;;  %v1590_v2 = vrot.slane %v1585_v61, 3 }
0x17dc   :  { %v1593_v3 = vadd.f32 %v1589_v62, %v2370_v53  ;;  %v1594_v4 = vadd.f32 %v1590_v2, %v2372_v54  ;;  %v1414_v53 = vperm.slane %v2435_v13, 0  ;;  %v1343_v54 = vrot.slane %v2421_v17, 1 }
0x17dd   :  { %v1483_v17 = vrot.slane %v2449_v35, 1 }
0x17de   :  { %v1597_v5 = vrot.slane %v1593_v3, 6  ;;  %v1598_v6 = vrot.slane %v1594_v4, 5  ;;  %v1345_v63 = vperm.slane %v1343_v54, 0 }
0x17df   :  { %v1485_v36 = vperm.slane %v1483_v17, 0 }
0x17e0   :  { %v1599_v7 = vsel %vm1176_vm1, %v1598_v6, %v1597_v5 }
0x17e1   :  { %v1601_v14 = vmul.f32 %v2378_v56, %v1599_v7 }
0x17e3   :  { %1927 = vtanh.f32 %v1601_v14 }
0x17e9   :  { %v1928_v8 = vpop.eup %1927 }
0x17ea   :  { %v1603_v9 = vmul.f32 %v1928_v8, %v2378_v56 }
0x17ec   :  { %v1604_v10 = vadd.f32 %v1603_v9, %v2386_v1  ;;  %v1274_v1 = vperm.slane %v2407_v31, 0  ;;  %v1553_v31 = vrot.slane %v2463_v59, 1 }
0x17ee   :  { %1607 = vrot.lane.b32.xlu0 %v1604_v10, %s2120_s3  ;;  %v1605_v24 = vmul.f32 %v1604_v10, %v1545_v55  ;;  %v1555_v44 = vperm.slane %v1553_v31, 0 }
0x17f6   :  { %1207 = vrot.lane.b32.xlu0 %v1205_v12, %s2121_s26 }
0x17fe   :  { %1416 = vrot.lane.b32.xlu0 %v1414_v53, %s2121_s26 }
0x1806   :  { %1348 = vrot.lane.b32.xlu0 %v1345_v63, %s2121_s26 }
0x1860   :  { %v1608_v15 = vpop.permute.xlu0 %1607 }
0x1861   :  { %v1610_v0 = vmul.f32 %v1608_v15, %v1604_v10 }
0x1863   :  { %1612 = vrot.lane.b32.xlu1 %v1610_v0, %s2121_s26 }
0x1868   :  { %v1208_v56 = vpop.permute.xlu0 %1207 }
0x1869   :  { %1214 = vst.msk [vmem:[#allocation2] sm:$0x1] %vm1213_vm6, %v1208_v56 }
0x186b   :  { %1276 = vrot.lane.b32.xlu1 %v1274_v1, %s2121_s26 }
0x1870   :  { %v1417_v16 = vpop.permute.xlu0 %1416 }
0x1871   :  { %1422 = vst.msk [vmem:[#allocation2 + $0x3] sm:$0x1] %vm1213_vm6, %v1417_v16 }
0x1873   :  { %1486 = vrot.lane.b32.xlu1 %v1484_v18, %s2121_s26 }
0x1878   :  { %v1349_v20 = vpop.permute.xlu0 %1348 }
0x1879   :  { %1353 = vst.msk [vmem:[#allocation2 + $0xa] sm:$0x1] %vm1213_vm6, %v1349_v20 }
0x187b   :  { %1209 = vrot.lane.b32.xlu1 %v1206_v21, %s2121_s26 }
0x1883   :  { %1418 = vrot.lane.b32.xlu1 %v1415_v23, %s2121_s26 }
0x18d5   :  { %v1613_v25 = vpop.permute.xlu1 %1612 }
0x18d6   :  { %v1615_v26 = vadd.f32 %v1613_v25, %v1605_v24 }
0x18d8   :  { %1929 = vtanh.f32 %v1615_v26 }
0x18dd   :  { %v1277_v27 = vpop.permute.xlu1 %1276 }
0x18de   :  { %v1930_v28 = vpop.eup %1929  ;;  %1282 = vst.msk [vmem:[#allocation2 + $0x1] sm:$0x1] %vm1213_vm6, %v1277_v27 }
0x18df   :  { %1618 = vrot.lane.b32.xlu2 %v1930_v28, %s2120_s3 }
0x18e5   :  { %v1487_v11 = vpop.permute.xlu1 %1486 }
0x18e6   :  { %1492 = vst.msk [vmem:[#allocation2 + $0x4] sm:$0x1] %vm1213_vm6, %v1487_v11 }
0x18e7   :  { %1346 = vrot.lane.b32.xlu2 %v1344_v29, %s2121_s26 }
0x18ed   :  { %v1210_v13 = vpop.permute.xlu1 %1209 }
0x18ee   :  { %1215 = vst.msk [vmem:[#allocation2 + $0x8] sm:$0x1] %vm1213_vm6, %v1210_v13 }
0x18ef   :  { %1556 = vrot.lane.b32.xlu2 %v1554_v32, %s2121_s26 }
0x18f5   :  { %v1419_v33 = vpop.permute.xlu1 %1418 }
0x18f6   :  { %1423 = vst.msk [vmem:[#allocation2 + $0xb] sm:$0x1] %vm1213_vm6, %v1419_v33 }
0x18f7   :  { %1278 = vrot.lane.b32.xlu2 %v1275_v34, %s2121_s26 }
0x18ff   :  { %1488 = vrot.lane.b32.xlu2 %v1485_v36, %s2121_s26 }
0x1939   :  { %v1619_v38 = vpop.permute.xlu2 %1618 }
0x193a   :  { %v1621_v39 = vmul.f32 %v1619_v38, %v1604_v10 }
0x193c   :  { %v1623_v40 = vrot.slane %v1621_v39, 1  ;;  %v1624_v41 = vperm.slane %v1621_v39, 0 }
0x193e   :  { %v1625_v42 = vperm.slane %v1623_v40, 0  ;;  %1626 = vrot.lane.b32.xlu0 %v1624_v41, %s2121_s26 }
0x1940   :  { %1628 = vrot.lane.b32.xlu1 %v1625_v42, %s2121_s26 }
0x1941   :  { %v1347_v43 = vpop.permute.xlu2 %1346 }
0x1942   :  { %1352 = vst.msk [vmem:[#allocation2 + $0x2] sm:$0x1] %vm1213_vm6, %v1347_v43 }
0x1946   :  { %1558 = vrot.lane.b32.xlu0 %v1555_v44, %s2121_s26 }
0x1949   :  { %v1557_v35 = vpop.permute.xlu2 %1556 }
0x194a   :  { %1562 = vst.msk [vmem:[#allocation2 + $0x5] sm:$0x1] %vm1213_vm6, %v1557_v35 }
0x1951   :  { %v1279_v45 = vpop.permute.xlu2 %1278 }
0x1952   :  { %1283 = vst.msk [vmem:[#allocation2 + $0x9] sm:$0x1] %vm1213_vm6, %v1279_v45 }
0x1959   :  { %v1489_v46 = vpop.permute.xlu2 %1488 }
0x195a   :  { %1493 = vst.msk [vmem:[#allocation2 + $0xc] sm:$0x1] %vm1213_vm6, %v1489_v46 }
0x19b0   :  { %v1627_v50 = vpop.permute.xlu0 %1626 }
0x19b1   :  { %1632 = vst.msk [vmem:[#allocation2 + $0x6] sm:$0x1] %vm1213_vm6, %v1627_v50 }
0x19b2   :  { %v1629_v51 = vpop.permute.xlu1 %1628 }
0x19b3   :  { %1633 = vst.msk [vmem:[#allocation2 + $0xe] sm:$0x1] %vm1213_vm6, %v1629_v51 }
0x19b8   :  { %v1634_v52 = vld [vmem:[#allocation2] sm:$0x7f]  ;;  %v1559_v55 = vpop.permute.xlu0 %1558 }
0x19b9   :  { %v1638_v57 = vrot.slane %v1634_v52, 1  ;;  %v1639_v58 = vrot.slane %v1634_v52, 2  ;;  %v1640_v59 = vrot.slane %v1634_v52, 3  ;;  %v1641_v60 = vrot.slane %v1634_v52, 4  ;;  %1563 = vst.msk [vmem:[#allocation2 + $0xd] sm:$0x1] %vm1213_vm6, %v1559_v55 }
0x19ba   :  { %v1642_v61 = vrot.slane %v1634_v52, 5  ;;  %v1643_v62 = vrot.slane %v1634_v52, 6  ;;  %v1662_v2 = vmax.f32 %v1634_v52, 0.0 }
0x19bb   :  { %v1663_v3 = vmax.f32 %v1638_v57, 0.0  ;;  %v1664_v4 = vmax.f32 %v1639_v58, 0.0  ;;  %v1665_v5 = vmax.f32 %v1640_v59, 0.0  ;;  %v1666_v6 = vmax.f32 %v1641_v60, 0.0 }
0x19bc   :  { %1698 = vst [vmem:[#allocation1] ss:$9 sm:$0xff] %v1662_v2  ;;  %v1667_v7 = vmax.f32 %v1642_v61, 0.0  ;;  %v1668_v14 = vmax.f32 %v1643_v62, 0.0 }
0x19bd   :  { %1700 = vst [vmem:[#allocation1 + $0x1] ss:$9 sm:$0xff] %v1663_v3 }
0x19be   :  { %1702 = vst [vmem:[#allocation1 + $0x2] ss:$9 sm:$0xff] %v1664_v4 }
0x19bf   :  { %1704 = vst [vmem:[#allocation1 + $0x3] ss:$9 sm:$0xff] %v1665_v5 }
0x19c0   :  { %1706 = vst [vmem:[#allocation1 + $0x4] ss:$9 sm:$0xff] %v1666_v6  ;;  %v1635_v8 = vld [vmem:[#allocation2 + $0x8] sm:$0x7f] }
0x19c1   :  { %1708 = vst [vmem:[#allocation1 + $0x5] ss:$9 sm:$0xff] %v1667_v7  ;;  %v1669_v9 = vmax.f32 %v1635_v8, 0.0  ;;  %v1644_v10 = vrot.slane %v1635_v8, 1  ;;  %v1645_v12 = vrot.slane %v1635_v8, 2  ;;  %v1646_v53 = vrot.slane %v1635_v8, 3 }
0x19c2   :  { %1710 = vst [vmem:[#allocation1 + $0x6] ss:$9 sm:$0xff] %v1668_v14  ;;  %v1647_v54 = vrot.slane %v1635_v8, 4  ;;  %v1648_v63 = vrot.slane %v1635_v8, 5  ;;  %v1649_v0 = vrot.slane %v1635_v8, 6 }
0x19c3   :  { %1712 = vst [vmem:[#allocation1 + $0x7] ss:$9 sm:$0xff] %v1669_v9  ;;  %v1670_v15 = vmax.f32 %v1644_v10, 0.0  ;;  %v1671_v56 = vmax.f32 %v1645_v12, 0.0  ;;  %v1672_v16 = vmax.f32 %v1646_v53, 0.0 }
0x19c4   :  { %v1673_v18 = vmax.f32 %v1647_v54, 0.0  ;;  %v1674_v19 = vmax.f32 %v1648_v63, 0.0  ;;  %v1675_v20 = vmax.f32 %v1649_v0, 0.0 }
0x19ca   :  { %v1713_v1 = vld [vmem:[#allocation1] sm:$0xff] }
0x19cb   :  { %1714 = vst [vmem:[#allocation1] ss:$9 sm:$0xff] %v1670_v15  ;;  %1845 = vmatmul.msk.f32.vlgmr.msrb.gmra.mxu0 %vm162_vm0, %v1713_v1 }
0x19cc   :  { %1715 = vst [vmem:[#allocation1 + $0x1] ss:$9 sm:$0xff] %v1671_v56 }
0x19cd   :  { %1716 = vst [vmem:[#allocation1 + $0x2] ss:$9 sm:$0xff] %v1672_v16 }
0x19ce   :  { %1717 = vst [vmem:[#allocation1 + $0x3] ss:$9 sm:$0xff] %v1673_v18 }
0x19cf   :  { %1718 = vst [vmem:[#allocation1 + $0x4] ss:$9 sm:$0xff] %v1674_v19 }
0x19d0   :  { %1719 = vst [vmem:[#allocation1 + $0x5] ss:$9 sm:$0xff] %v1675_v20 }
0x19d7   :  { %v1720_v21 = vld [vmem:[#allocation1] sm:$0xff] }
0x19d8   :  { %1846 = vmatmul.msk.f32.gmra.mxu0 %vm162_vm0, %v1720_v21  ;;  %vm1786_vm0 = vcmask 30720  }
0x1a48   :  { %v1742_v23 = vpop.f32.mrf.mxu0 }
0x1a49   :  { %v1743_v24 = vadd.f32 %v1870_v22, %v1742_v23 }
0x1a4b   :  { %v1751_v25 = vrot.slane %v1743_v24, 2  ;;  %v1752_v26 = vrot.slane %v1743_v24, 3  ;;  %v1753_v27 = vrot.slane %v1743_v24, 4  ;;  %1762 = vst [vmem:[#allocation1] ss:$9 sm:$0xff] %v1743_v24  ;;  %v1754_v28 = vrot.slane %v1743_v24, 5 }
0x1a4c   :  { %v1755_v11 = vrot.slane %v1743_v24, 6  ;;  %v1750_v29 = vrot.slane %v1743_v24, 1  ;;  %v1756_v37 = vrot.slane %v1743_v24, 7 }
0x1a4d   :  { %1766 = vst [vmem:[#allocation1 + $0x2] ss:$9 sm:$0xff] %v1751_v25 }
0x1a4e   :  { %1768 = vst [vmem:[#allocation1 + $0x3] ss:$9 sm:$0xff] %v1752_v26 }
0x1a4f   :  { %1770 = vst [vmem:[#allocation1 + $0x4] ss:$9 sm:$0xff] %v1753_v27 }
0x1a50   :  { %1772 = vst [vmem:[#allocation1 + $0x5] ss:$9 sm:$0xff] %v1754_v28 }
0x1a51   :  { %1774 = vst [vmem:[#allocation1 + $0x6] ss:$9 sm:$0xff] %v1755_v11 }
0x1a52   :  { %1764 = vst [vmem:[#allocation1 + $0x1] ss:$9 sm:$0xff] %v1750_v29 }
0x1a55   :  { %v1745_v13 = vpop.f32.mrf.mxu0 }
0x1a56   :  { %v1746_v32 = vadd.f32 %v1870_v22, %v1745_v13 }
0x1a58   :  { %v1757_v33 = vrot.slane %v1746_v32, 1  ;;  %v1758_v34 = vrot.slane %v1746_v32, 2  ;;  %v1759_v36 = vrot.slane %v1746_v32, 3  ;;  %v1760_v38 = vrot.slane %v1746_v32, 4 }
0x1a59   :  { %v1775_v17 = vld [vmem:[#allocation1] sm:$0xff]  ;;  %v1761_v39 = vrot.slane %v1746_v32, 5 }
0x1a5a   :  { %1776 = vst [vmem:[#allocation1] ss:$9 sm:$0xff] %v1756_v37 }
0x1a5b   :  { %1777 = vst [vmem:[#allocation1 + $0x1] ss:$9 sm:$0xff] %v1746_v32 }
0x1a5c   :  { %1778 = vst [vmem:[#allocation1 + $0x2] ss:$9 sm:$0xff] %v1757_v33 }
0x1a5d   :  { %1779 = vst [vmem:[#allocation1 + $0x3] ss:$9 sm:$0xff] %v1758_v34 }
0x1a5e   :  { %1780 = vst [vmem:[#allocation1 + $0x4] ss:$9 sm:$0xff] %v1759_v36 }
0x1a5f   :  { %1781 = vst [vmem:[#allocation1 + $0x5] ss:$9 sm:$0xff] %v1760_v38 }
0x1a60   :  { %1782 = vst [vmem:[#allocation1 + $0x6] ss:$9 sm:$0xff] %v1761_v39 }
0x1a61   :  { %1787 = vst.msk [vmem:[%s2554_s14] sm:$0x7f] %vm1786_vm0, %v1775_v17 }
0x1a67   :  { %v1783_v40 = vld [vmem:[#allocation1] sm:$0xff] }
0x1a68   :  { %1788 = vst.msk [vmem:[%s2554_s14 + $0x8] sm:$0x7f] %vm1786_vm0, %v1783_v40 }
0x1a69   :  { %1793 = vsyncpa [#allocation4], 1 }
0x1a6a   :  { %1794 = vsyncpa [#allocation6], 1 }
0x1a6b   :  { %1795 = vsyncpa [#allocation9], 1 }
0x1a6c   :  { %1796 = vsyncpa [#allocation12], 1 }

</bundles_post_ra>
